<compile_context>
chip_gen: v7x
topology: tpu7x:2x2x1
jax: 0.10.0
libtpu: 0.0.40
codegen_flags: <defaults>
</compile_context>

<pallas_src>
import functools

import jax
import jax.numpy as jnp
from jax.experimental import pallas as pl
from jax.experimental.pallas import tpu as pltpu

HL = 512  # self.hl_size in the PyTorch module


def _round_up(x, m):
    return ((x + m - 1) // m) * m


def actor_kernel(obs_ref, win_ref, bin_ref,
                 w1_ref, b1_ref,
                 w2_ref, b2_ref,
                 wout_ref, bout_ref,
                 g1_ref, g2_ref,
                 out_ref):
    # x = relu(fc_in(obs))
    h = jnp.dot(obs_ref[...].astype(jnp.bfloat16), win_ref[...],
                preferred_element_type=jnp.float32) + bin_ref[...]
    h = jnp.maximum(h, 0.0)

    # x = relu(fc1(x)) * gfc1   (gate broadcast (1,HL) -> (TM,HL))
    h = jnp.dot(h.astype(jnp.bfloat16), w1_ref[...],
                preferred_element_type=jnp.float32) + b1_ref[...]
    h = jnp.maximum(h, 0.0) * g1_ref[...]

    # x = relu(fc2(x)) * gfc2
    h = jnp.dot(h.astype(jnp.bfloat16), w2_ref[...],
                preferred_element_type=jnp.float32) + b2_ref[...]
    h = jnp.maximum(h, 0.0) * g2_ref[...]

    # x = fc_out(x)   (lane-dense, a_dim padded to 128)
    out_ref[...] = jnp.dot(h.astype(jnp.bfloat16), wout_ref[...],
                           preferred_element_type=jnp.float32) + bout_ref[...]


def actor_forward(obs, params, s=1.0):
    """ActorNet forward pass.  Returns (action_logits, [gfc1, gfc2])."""
    B, s_dim = obs.shape
    a_dim = params["wout"].shape[1]

    # mask(): batch-independent gates, computed once outside the kernel.
    gfc1 = jax.nn.sigmoid(s * params["e1"]).astype(jnp.float32)   # (1, HL)
    gfc2 = jax.nn.sigmoid(s * params["e2"]).astype(jnp.float32)   # (1, HL)

    # Lane-dense padding of the small dims + batch-tile padding.
    S_PAD = _round_up(s_dim, 128)
    A_PAD = _round_up(a_dim, 128)
    TM = 256 if B >= 256 else _round_up(B, 8)
    B_PAD = _round_up(B, TM)

    obs_p = jnp.zeros((B_PAD, S_PAD), jnp.float32).at[:B, :s_dim].set(obs)
    win_p = (jnp.zeros((S_PAD, HL), jnp.bfloat16)
             .at[:s_dim, :].set(params["win"].astype(jnp.bfloat16)))
    w1 = params["w1"].astype(jnp.bfloat16)
    w2 = params["w2"].astype(jnp.bfloat16)
    wout_p = (jnp.zeros((HL, A_PAD), jnp.bfloat16)
              .at[:, :a_dim].set(params["wout"].astype(jnp.bfloat16)))
    bout_p = (jnp.zeros((1, A_PAD), jnp.float32)
              .at[:, :a_dim].set(params["bout"]))

    def resident(shape):
        # Whole array as one block; same block index every grid step
        # -> DMA'd once, stays VMEM-resident across batch tiles.
        return pl.BlockSpec(shape, lambda i, _n=len(shape): (0,) * _n)

    out = pl.pallas_call(
        actor_kernel,
        out_shape=jax.ShapeDtypeStruct((B_PAD, A_PAD), jnp.float32),
        grid=(B_PAD // TM,),
        in_specs=[
            pl.BlockSpec((TM, S_PAD), lambda i: (i, 0)),   # obs: streamed
            resident((S_PAD, HL)),  resident((1, HL)),     # fc_in
            resident((HL, HL)),     resident((1, HL)),     # fc1
            resident((HL, HL)),     resident((1, HL)),     # fc2
            resident((HL, A_PAD)),  resident((1, A_PAD)),  # fc_out
            resident((1, HL)),      resident((1, HL)),     # gfc1, gfc2
        ],
        out_specs=pl.BlockSpec((TM, A_PAD), lambda i: (i, 0)),
        compiler_params=pltpu.CompilerParams(
            dimension_semantics=("parallel",)),
    )(obs_p, win_p, params["bin"], w1, params["b1"], w2, params["b2"],
      wout_p, bout_p, gfc1, gfc2)

    return out[:B, :a_dim], [gfc1, gfc2]


def init_params(key, s_dim, a_dim):
    """Deterministic synthetic parameters (shapes follow ActorNet.__init__ /
    task_configure with a 1-D state space).  Linear weights are stored
    pre-transposed as (in, out), equivalent to PyTorch's x @ W.T + b."""
    ks = jax.random.split(key, 10)
    scale = 0.05

    def lin(kw, kb, n_in, n_out):
        w = scale * jax.random.normal(kw, (n_in, n_out), dtype=jnp.float32)
        b = scale * jax.random.normal(kb, (1, n_out), dtype=jnp.float32)
        return w, b

    win, bin_ = lin(ks[0], ks[1], s_dim, HL)      # fc_ins[task]
    w1, b1 = lin(ks[2], ks[3], HL, HL)            # fc1
    w2, b2 = lin(ks[4], ks[5], HL, HL)            # fc2
    wout, bout = lin(ks[6], ks[7], HL, a_dim)     # fc_outs[task]
    e1 = scale * jax.random.normal(ks[8], (1, HL), dtype=jnp.float32)  # efc1(0)
    e2 = scale * jax.random.normal(ks[9], (1, HL), dtype=jnp.float32)  # efc2(0)
    return dict(win=win, bin=bin_, w1=w1, b1=b1, w2=w2, b2=b2,
                wout=wout, bout=bout, e1=e1, e2=e2)


def reference_forward(obs, p, s=1.0):
    """Pure-JAX f32 reference matching the PyTorch module."""
    gfc1 = jax.nn.sigmoid(s * p["e1"])
    gfc2 = jax.nn.sigmoid(s * p["e2"])
    h = jax.nn.relu(obs @ p["win"] + p["bin"])
    h = jax.nn.relu(h @ p["w1"] + p["b1"]) * gfc1
    h = jax.nn.relu(h @ p["w2"] + p["b2"]) * gfc2
    return h @ p["wout"] + p["bout"], [gfc1, gfc2]


if __name__ == "__main__":
    key = jax.random.PRNGKey(0)
    k_obs, k_par = jax.random.split(key)

    B, s_dim, a_dim = 2, 8, 4
    obs = jax.random.normal(k_obs, (B, s_dim), dtype=jnp.float32)
    params = init_params(k_par, s_dim, a_dim)

    fwd = jax.jit(functools.partial(actor_forward, s=1.0))
    out, masks = fwd(obs, params)
    out = jax.block_until_ready(out)
    g1 = jax.block_until_ready(masks[0])
    g2 = jax.block_until_ready(masks[1])

    ref_out, (ref_g1, ref_g2) = reference_forward(obs, params, s=1.0)
    # bf16 weights in the kernel vs f32 reference -> loose-ish tolerance.
    assert jnp.allclose(out, ref_out, atol=2e-2, rtol=2e-2), (
        f"max abs err {jnp.max(jnp.abs(out - ref_out))}")
    assert jnp.allclose(g1, ref_g1, atol=1e-5)
    assert jnp.allclose(g2, ref_g2, atol=1e-5)
    assert out.shape == (B, a_dim) and g1.shape == (1, HL) and g2.shape == (1, HL)

    print("KERNEL_OK")
</pallas_src>

<mosaic_0001>
module attributes {stable_mosaic.version = 11 : i64} {
  func.func @actor_kernel(%arg0: i32, %arg1: memref<8x128xf32, #tpu.memory_space<vmem>>, %arg2: memref<128x512xbf16, #tpu.memory_space<vmem>>, %arg3: memref<1x512xf32, #tpu.memory_space<vmem>>, %arg4: memref<512x512xbf16, #tpu.memory_space<vmem>>, %arg5: memref<1x512xf32, #tpu.memory_space<vmem>>, %arg6: memref<512x512xbf16, #tpu.memory_space<vmem>>, %arg7: memref<1x512xf32, #tpu.memory_space<vmem>>, %arg8: memref<512x128xbf16, #tpu.memory_space<vmem>>, %arg9: memref<1x128xf32, #tpu.memory_space<vmem>>, %arg10: memref<1x512xf32, #tpu.memory_space<vmem>>, %arg11: memref<1x512xf32, #tpu.memory_space<vmem>>, %arg12: memref<8x128xf32, #tpu.memory_space<vmem>>) attributes {dimension_semantics = [#tpu.dimension_semantics<parallel>], iteration_bounds = array<i64: 1>, scalar_prefetch = 0 : i64, scratch_operands = 0 : i64, tpu.core_type = #tpu.core_type<tc>, window_params = [{transform_indices = @transform_0, window_bounds = array<i64: 8, 128>}, {pipeline_mode = #tpu.pipeline_mode<synchronous>, transform_indices = @transform_1, window_bounds = array<i64: 128, 512>}, {pipeline_mode = #tpu.pipeline_mode<synchronous>, transform_indices = @transform_2, window_bounds = array<i64: 1, 512>}, {pipeline_mode = #tpu.pipeline_mode<synchronous>, transform_indices = @transform_3, window_bounds = array<i64: 512, 512>}, {pipeline_mode = #tpu.pipeline_mode<synchronous>, transform_indices = @transform_4, window_bounds = array<i64: 1, 512>}, {pipeline_mode = #tpu.pipeline_mode<synchronous>, transform_indices = @transform_5, window_bounds = array<i64: 512, 512>}, {pipeline_mode = #tpu.pipeline_mode<synchronous>, transform_indices = @transform_6, window_bounds = array<i64: 1, 512>}, {pipeline_mode = #tpu.pipeline_mode<synchronous>, transform_indices = @transform_7, window_bounds = array<i64: 512, 128>}, {pipeline_mode = #tpu.pipeline_mode<synchronous>, transform_indices = @transform_8, window_bounds = array<i64: 1, 128>}, {pipeline_mode = #tpu.pipeline_mode<synchronous>, transform_indices = @transform_9, window_bounds = array<i64: 1, 512>}, {pipeline_mode = #tpu.pipeline_mode<synchronous>, transform_indices = @transform_10, window_bounds = array<i64: 1, 512>}, {transform_indices = @transform_11, window_bounds = array<i64: 8, 128>}]} {
    %c0 = arith.constant 0 : index
    %c0_0 = arith.constant 0 : index
    %0 = vector.load %arg1[%c0, %c0_0] : memref<8x128xf32, #tpu.memory_space<vmem>>, vector<8x128xf32>
    %1 = arith.truncf %0 : vector<8x128xf32> to vector<8x128xbf16>
    %c0_1 = arith.constant 0 : index
    %c0_2 = arith.constant 0 : index
    %2 = vector.load %arg2[%c0_1, %c0_2] : memref<128x512xbf16, #tpu.memory_space<vmem>>, vector<128x512xbf16>
    %cst = arith.constant dense<0.000000e+00> : vector<8x512xf32>
    %3 = tpu.matmul %1, %2, %cst {dimension_numbers = #tpu.dot_dimension_numbers<[1], [0], [0], [1], [0, 0, 1, 1], [], []>} : vector<8x128xbf16>, vector<128x512xbf16>, vector<8x512xf32> -> vector<8x512xf32>
    %c0_3 = arith.constant 0 : index
    %c0_4 = arith.constant 0 : index
    %4 = vector.load %arg3[%c0_3, %c0_4] : memref<1x512xf32, #tpu.memory_space<vmem>>, vector<1x512xf32>
    %5 = vector.broadcast %4 : vector<1x512xf32> to vector<8x512xf32>
    %6 = arith.addf %3, %5 : vector<8x512xf32>
    %cst_5 = arith.constant 0.000000e+00 : f32
    %7 = vector.broadcast %cst_5 : f32 to vector<8x512xf32>
    %8 = arith.maximumf %6, %7 : vector<8x512xf32>
    %9 = arith.truncf %8 : vector<8x512xf32> to vector<8x512xbf16>
    %c0_6 = arith.constant 0 : index
    %c0_7 = arith.constant 0 : index
    %10 = vector.load %arg4[%c0_6, %c0_7] : memref<512x512xbf16, #tpu.memory_space<vmem>>, vector<512x512xbf16>
    %cst_8 = arith.constant dense<0.000000e+00> : vector<8x512xf32>
    %11 = tpu.matmul %9, %10, %cst_8 {dimension_numbers = #tpu.dot_dimension_numbers<[1], [0], [0], [1], [0, 0, 1, 1], [], []>} : vector<8x512xbf16>, vector<512x512xbf16>, vector<8x512xf32> -> vector<8x512xf32>
    %c0_9 = arith.constant 0 : index
    %c0_10 = arith.constant 0 : index
    %12 = vector.load %arg5[%c0_9, %c0_10] : memref<1x512xf32, #tpu.memory_space<vmem>>, vector<1x512xf32>
    %13 = vector.broadcast %12 : vector<1x512xf32> to vector<8x512xf32>
    %14 = arith.addf %11, %13 : vector<8x512xf32>
    %cst_11 = arith.constant 0.000000e+00 : f32
    %15 = vector.broadcast %cst_11 : f32 to vector<8x512xf32>
    %16 = arith.maximumf %14, %15 : vector<8x512xf32>
    %c0_12 = arith.constant 0 : index
    %c0_13 = arith.constant 0 : index
    %17 = vector.load %arg10[%c0_12, %c0_13] : memref<1x512xf32, #tpu.memory_space<vmem>>, vector<1x512xf32>
    %18 = vector.broadcast %17 : vector<1x512xf32> to vector<8x512xf32>
    %19 = arith.mulf %16, %18 : vector<8x512xf32>
    %20 = arith.truncf %19 : vector<8x512xf32> to vector<8x512xbf16>
    %c0_14 = arith.constant 0 : index
    %c0_15 = arith.constant 0 : index
    %21 = vector.load %arg6[%c0_14, %c0_15] : memref<512x512xbf16, #tpu.memory_space<vmem>>, vector<512x512xbf16>
    %cst_16 = arith.constant dense<0.000000e+00> : vector<8x512xf32>
    %22 = tpu.matmul %20, %21, %cst_16 {dimension_numbers = #tpu.dot_dimension_numbers<[1], [0], [0], [1], [0, 0, 1, 1], [], []>} : vector<8x512xbf16>, vector<512x512xbf16>, vector<8x512xf32> -> vector<8x512xf32>
    %c0_17 = arith.constant 0 : index
    %c0_18 = arith.constant 0 : index
    %23 = vector.load %arg7[%c0_17, %c0_18] : memref<1x512xf32, #tpu.memory_space<vmem>>, vector<1x512xf32>
    %24 = vector.broadcast %23 : vector<1x512xf32> to vector<8x512xf32>
    %25 = arith.addf %22, %24 : vector<8x512xf32>
    %cst_19 = arith.constant 0.000000e+00 : f32
    %26 = vector.broadcast %cst_19 : f32 to vector<8x512xf32>
    %27 = arith.maximumf %25, %26 : vector<8x512xf32>
    %c0_20 = arith.constant 0 : index
    %c0_21 = arith.constant 0 : index
    %28 = vector.load %arg11[%c0_20, %c0_21] : memref<1x512xf32, #tpu.memory_space<vmem>>, vector<1x512xf32>
    %29 = vector.broadcast %28 : vector<1x512xf32> to vector<8x512xf32>
    %30 = arith.mulf %27, %29 : vector<8x512xf32>
    %31 = arith.truncf %30 : vector<8x512xf32> to vector<8x512xbf16>
    %c0_22 = arith.constant 0 : index
    %c0_23 = arith.constant 0 : index
    %32 = vector.load %arg8[%c0_22, %c0_23] : memref<512x128xbf16, #tpu.memory_space<vmem>>, vector<512x128xbf16>
    %cst_24 = arith.constant dense<0.000000e+00> : vector<8x128xf32>
    %33 = tpu.matmul %31, %32, %cst_24 {dimension_numbers = #tpu.dot_dimension_numbers<[1], [0], [0], [1], [0, 0, 1, 1], [], []>} : vector<8x512xbf16>, vector<512x128xbf16>, vector<8x128xf32> -> vector<8x128xf32>
    %c0_25 = arith.constant 0 : index
    %c0_26 = arith.constant 0 : index
    %34 = vector.load %arg9[%c0_25, %c0_26] : memref<1x128xf32, #tpu.memory_space<vmem>>, vector<1x128xf32>
    %35 = vector.broadcast %34 : vector<1x128xf32> to vector<8x128xf32>
    %36 = arith.addf %33, %35 : vector<8x128xf32>
    %c0_27 = arith.constant 0 : index
    %c0_28 = arith.constant 0 : index
    %37 = vector.load %arg12[%c0_27, %c0_28] : memref<8x128xf32, #tpu.memory_space<vmem>>, vector<8x128xf32>
    tpu.vector_store %arg12[%c0_27, %c0_28], %36 {strides = array<i32>} : memref<8x128xf32, #tpu.memory_space<vmem>>, vector<8x128xf32>,
    return
  }
  func.func @transform_0(%arg0: i32) -> (i32, i32) {
    %c0_i32 = arith.constant 0 : i32
    %c0_i32_0 = arith.constant 0 : i32
    return %arg0, %c0_i32 : i32, i32
  }
  func.func @transform_1(%arg0: i32) -> (i32, i32) {
    %c0_i32 = arith.constant 0 : i32
    %c0_i32_0 = arith.constant 0 : i32
    %c0_i32_1 = arith.constant 0 : i32
    return %c0_i32, %c0_i32_0 : i32, i32
  }
  func.func @transform_2(%arg0: i32) -> (i32, i32) {
    %c0_i32 = arith.constant 0 : i32
    %c0_i32_0 = arith.constant 0 : i32
    %c0_i32_1 = arith.constant 0 : i32
    return %c0_i32, %c0_i32_0 : i32, i32
  }
  func.func @transform_3(%arg0: i32) -> (i32, i32) {
    %c0_i32 = arith.constant 0 : i32
    %c0_i32_0 = arith.constant 0 : i32
    %c0_i32_1 = arith.constant 0 : i32
    return %c0_i32, %c0_i32_0 : i32, i32
  }
  func.func @transform_4(%arg0: i32) -> (i32, i32) {
    %c0_i32 = arith.constant 0 : i32
    %c0_i32_0 = arith.constant 0 : i32
    %c0_i32_1 = arith.constant 0 : i32
    return %c0_i32, %c0_i32_0 : i32, i32
  }
  func.func @transform_5(%arg0: i32) -> (i32, i32) {
    %c0_i32 = arith.constant 0 : i32
    %c0_i32_0 = arith.constant 0 : i32
    %c0_i32_1 = arith.constant 0 : i32
    return %c0_i32, %c0_i32_0 : i32, i32
  }
  func.func @transform_6(%arg0: i32) -> (i32, i32) {
    %c0_i32 = arith.constant 0 : i32
    %c0_i32_0 = arith.constant 0 : i32
    %c0_i32_1 = arith.constant 0 : i32
    return %c0_i32, %c0_i32_0 : i32, i32
  }
  func.func @transform_7(%arg0: i32) -> (i32, i32) {
    %c0_i32 = arith.constant 0 : i32
    %c0_i32_0 = arith.constant 0 : i32
    %c0_i32_1 = arith.constant 0 : i32
    return %c0_i32, %c0_i32_0 : i32, i32
  }
  func.func @transform_8(%arg0: i32) -> (i32, i32) {
    %c0_i32 = arith.constant 0 : i32
    %c0_i32_0 = arith.constant 0 : i32
    %c0_i32_1 = arith.constant 0 : i32
    return %c0_i32, %c0_i32_0 : i32, i32
  }
  func.func @transform_9(%arg0: i32) -> (i32, i32) {
    %c0_i32 = arith.constant 0 : i32
    %c0_i32_0 = arith.constant 0 : i32
    %c0_i32_1 = arith.constant 0 : i32
    return %c0_i32, %c0_i32_0 : i32, i32
  }
  func.func @transform_10(%arg0: i32) -> (i32, i32) {
    %c0_i32 = arith.constant 0 : i32
    %c0_i32_0 = arith.constant 0 : i32
    %c0_i32_1 = arith.constant 0 : i32
    return %c0_i32, %c0_i32_0 : i32, i32
  }
  func.func @transform_11(%arg0: i32) -> (i32, i32) {
    %c0_i32 = arith.constant 0 : i32
    %c0_i32_0 = arith.constant 0 : i32
    return %arg0, %c0_i32 : i32, i32
  }
}

</mosaic_0001>

<bundles_post_ra>
// kernel: actor_forward.1
= control target key start
LH: loop header
LB: loop body
LE: loop exit
PB: predicated region body
PF: predicated region fallthrough
CT: control target
= control target key end

     0   :  { %v3523_v1 = vmov 0   ;;  %s4615_s1 = inlined_call_operand.vmem [shape: bf16[128,512], index: 1, kind: input, shape index: {}]   ;;  %s4616_s3 = inlined_call_operand.vmem [shape: bf16[512,512], index: 3, kind: input, shape index: {}]   ;;  %s4617_s0 = inlined_call_operand.vmem [shape: f32[8,128], index: 0, kind: input, shape index: {}]   ;;  %s4618_s5 = inlined_call_operand.vmem [shape: bf16[512,512], index: 5, kind: input, shape index: {}]   ;;  %s4619_s2 = inlined_call_operand.vmem [shape: f32[1,512], index: 2, kind: input, shape index: {}]   ;;  %s4620_s7 = inlined_call_operand.vmem [shape: bf16[512,128], index: 7, kind: input, shape index: {}]   ;;  %s4621_s4 = inlined_call_operand.vmem [shape: f32[1,512], index: 4, kind: input, shape index: {}]   ;;  %s4622_s9 = inlined_call_operand.vmem [shape: f32[1,512], index: 9, kind: input, shape index: {}]   ;;  %s4623_s6 = inlined_call_operand.vmem [shape: f32[1,512], index: 6, kind: input, shape index: {}]   ;;  %s4624_s10 = inlined_call_operand.vmem [shape: f32[1,512], index: 10, kind: input, shape index: {}]   ;;  %s4625_s8 = inlined_call_operand.vmem [shape: f32[1,128], index: 8, kind: input, shape index: {}]   ;;  %s4626_s11 = inlined_call_operand.vmem [shape: f32[8,128], index: 11, kind: output, shape index: {}]  }
   0x1   :  { %v3059_v0 = vld [vmem:[%s4615_s1 + $0x4] ss:$16 sps:$4 sm:$0xff]   ;;  %287 = vmatprep.mubr.bf16.mxu0 %v3523_v1  ;;  %328 = vmatprep.mubr.bf16.mxu1 %v3523_v1  ;;  %v3061_v2 = vld [vmem:[%s4615_s1] ss:$16 sps:$4 sm:$0xff]   ;;  %v3083_v10 = vld [vmem:[%s4615_s1 + $0xc] ss:$16 sps:$4 sm:$0xff]  }
   0x2   :  { %255 = vmatprep.subr.bf16.mxu0 %v3059_v0  ;;  %v3062_v3 = vld [vmem:[%s4615_s1 + $0x24] ss:$16 sps:$4 sm:$0xff]   ;;  %v3064_v4 = vld [vmem:[%s4615_s1 + $0x20] ss:$16 sps:$4 sm:$0xff]   ;;  %v3085_v11 = vld [vmem:[%s4615_s1 + $0x8] ss:$16 sps:$4 sm:$0xff]   ;;  %296 = vmatprep.subr.bf16.mxu1 %v3083_v10 }
   0x3   :  { %256 = vmatpush1.bf16.msra.mxu0 %v3061_v2  ;;  %v3065_v5 = vld [vmem:[%s4615_s1 + $0x44] ss:$16 sps:$4 sm:$0xff]   ;;  %v3067_v6 = vld [vmem:[%s4615_s1 + $0x40] ss:$16 sps:$4 sm:$0xff]   ;;  %v3086_v12 = vld [vmem:[%s4615_s1 + $0x2c] ss:$16 sps:$4 sm:$0xff]   ;;  %297 = vmatpush1.bf16.msra.mxu1 %v3085_v11 }
   0x4   :  { %257 = vmatprep.subr.bf16.mxu0 %v3062_v3  ;;  %v3068_v7 = vld [vmem:[%s4615_s1 + $0x64] ss:$16 sps:$4 sm:$0xff]   ;;  %v3070_v8 = vld [vmem:[%s4615_s1 + $0x60] ss:$16 sps:$4 sm:$0xff]   ;;  %v3088_v14 = vld [vmem:[%s4615_s1 + $0x28] ss:$16 sps:$4 sm:$0xff]   ;;  %298 = vmatprep.subr.bf16.mxu1 %v3086_v12 }
   0x5   :  { %v3071_v9 = vld [vmem:[%s4615_s1 + $0x84] ss:$16 sps:$4 sm:$0xff]   ;;  %v3073_v13 = vld [vmem:[%s4615_s1 + $0x80] ss:$16 sps:$4 sm:$0xff]   ;;  %v3089_v15 = vld [vmem:[%s4615_s1 + $0x4c] ss:$16 sps:$4 sm:$0xff]  }
   0x6   :  { %v3074_v16 = vld [vmem:[%s4615_s1 + $0xa4] ss:$16 sps:$4 sm:$0xff]   ;;  %v3076_v17 = vld [vmem:[%s4615_s1 + $0xa0] ss:$16 sps:$4 sm:$0xff]   ;;  %v3091_v18 = vld [vmem:[%s4615_s1 + $0x48] ss:$16 sps:$4 sm:$0xff]  }
   0x7   :  { %258 = vmatpush1.bf16.msra.mxu0 %v3064_v4  ;;  %299 = vmatpush1.bf16.msra.mxu1 %v3088_v14  ;;  %v3092_v19 = vld [vmem:[%s4615_s1 + $0x6c] ss:$16 sps:$4 sm:$0xff]   ;;  %v3077_v20 = vld [vmem:[%s4615_s1 + $0xc4] ss:$16 sps:$4 sm:$0xff]   ;;  %v3079_v21 = vld [vmem:[%s4615_s1 + $0xc0] ss:$16 sps:$4 sm:$0xff]  }
   0x8   :  { %259 = vmatprep.subr.bf16.mxu0 %v3065_v5  ;;  %300 = vmatprep.subr.bf16.mxu1 %v3089_v15  ;;  %v3094_v22 = vld [vmem:[%s4615_s1 + $0x68] ss:$16 sps:$4 sm:$0xff]   ;;  %v3095_v23 = vld [vmem:[%s4615_s1 + $0x8c] ss:$16 sps:$4 sm:$0xff]   ;;  %v3080_v24 = vld [vmem:[%s4615_s1 + $0xe4] ss:$16 sps:$4 sm:$0xff]  }
   0x9   :  { %v3082_v25 = vld [vmem:[%s4615_s1 + $0xe0] ss:$16 sps:$4 sm:$0xff]   ;;  %v3097_v27 = vld [vmem:[%s4615_s1 + $0x88] ss:$16 sps:$4 sm:$0xff]   ;;  %v3098_v28 = vld [vmem:[%s4615_s1 + $0xac] ss:$16 sps:$4 sm:$0xff]  }
   0xa   :  { %v39_v26 = vld [vmem:[%s4617_s0] sm:$0xff]  ;;  %v3100_v31 = vld [vmem:[%s4615_s1 + $0xa8] ss:$16 sps:$4 sm:$0xff]   ;;  %v3101_v32 = vld [vmem:[%s4615_s1 + $0xcc] ss:$16 sps:$4 sm:$0xff]  }
   0xb   :  { %260 = vmatpush1.bf16.msra.mxu0 %v3067_v6  ;;  %301 = vmatpush1.bf16.msra.mxu1 %v3091_v18  ;;  %v3109_v29 = vld [vmem:[%s4616_s3 + $0x4] ss:$16 sps:$4 sm:$0xff]   ;;  %v40_v30 = vpack.c.bf16 %v39_v26, %v39_v26  ;;  %v3107_v33 = vld [vmem:[%s4616_s3] ss:$16 sps:$4 sm:$0xff]   ;;  %v3103_v35 = vld [vmem:[%s4615_s1 + $0xc8] ss:$16 sps:$4 sm:$0xff]  }
   0xc   :  { %261 = vmatprep.subr.bf16.mxu0 %v3068_v7  ;;  %302 = vmatprep.subr.bf16.mxu1 %v3092_v19  ;;  %v3115_v34 = vld [vmem:[%s4616_s3 + $0x24] ss:$16 sps:$4 sm:$0xff]   ;;  %v3104_v36 = vld [vmem:[%s4615_s1 + $0xec] ss:$16 sps:$4 sm:$0xff]   ;;  %v3113_v37 = vld [vmem:[%s4616_s3 + $0x20] ss:$16 sps:$4 sm:$0xff]  }
   0xd   :  { %v3121_v38 = vld [vmem:[%s4616_s3 + $0x44] ss:$16 sps:$4 sm:$0xff]   ;;  %v3106_v39 = vld [vmem:[%s4615_s1 + $0xe8] ss:$16 sps:$4 sm:$0xff]   ;;  %v3112_v40 = vld [vmem:[%s4616_s3 + $0xc] ss:$16 sps:$4 sm:$0xff]  }
   0xe   :  { %v3119_v41 = vld [vmem:[%s4616_s3 + $0x40] ss:$16 sps:$4 sm:$0xff]   ;;  %v3127_v42 = vld [vmem:[%s4616_s3 + $0x64] ss:$16 sps:$4 sm:$0xff]   ;;  %v3110_v43 = vld [vmem:[%s4616_s3 + $0x8] ss:$16 sps:$4 sm:$0xff]  }
   0xf   :  { %262 = vmatpush1.bf16.msra.mxu0 %v3070_v8  ;;  %303 = vmatpush1.bf16.msra.mxu1 %v3094_v22  ;;  %v3118_v44 = vld [vmem:[%s4616_s3 + $0x2c] ss:$16 sps:$4 sm:$0xff]   ;;  %v3125_v45 = vld [vmem:[%s4616_s3 + $0x60] ss:$16 sps:$4 sm:$0xff]   ;;  %v3133_v46 = vld [vmem:[%s4616_s3 + $0x84] ss:$16 sps:$4 sm:$0xff]  }
  0x10   :  { %263 = vmatprep.subr.bf16.mxu0 %v3071_v9  ;;  %304 = vmatprep.subr.bf16.mxu1 %v3095_v23  ;;  %v3116_v47 = vld [vmem:[%s4616_s3 + $0x28] ss:$16 sps:$4 sm:$0xff]   ;;  %v3124_v48 = vld [vmem:[%s4616_s3 + $0x4c] ss:$16 sps:$4 sm:$0xff]   ;;  %v3131_v49 = vld [vmem:[%s4616_s3 + $0x80] ss:$16 sps:$4 sm:$0xff]  }
  0x11   :  { %v3139_v50 = vld [vmem:[%s4616_s3 + $0xa4] ss:$16 sps:$4 sm:$0xff]   ;;  %v3122_v51 = vld [vmem:[%s4616_s3 + $0x48] ss:$16 sps:$4 sm:$0xff]   ;;  %v3130_v52 = vld [vmem:[%s4616_s3 + $0x6c] ss:$16 sps:$4 sm:$0xff]  }
  0x12   :  { %v3137_v53 = vld [vmem:[%s4616_s3 + $0xa0] ss:$16 sps:$4 sm:$0xff]   ;;  %v3145_v54 = vld [vmem:[%s4616_s3 + $0xc4] ss:$16 sps:$4 sm:$0xff]   ;;  %v3128_v55 = vld [vmem:[%s4616_s3 + $0x68] ss:$16 sps:$4 sm:$0xff]  }
  0x13   :  { %264 = vmatpush1.bf16.msra.mxu0 %v3073_v13  ;;  %305 = vmatpush1.bf16.msra.mxu1 %v3097_v27  ;;  %v3136_v56 = vld [vmem:[%s4616_s3 + $0x8c] ss:$16 sps:$4 sm:$0xff]   ;;  %v3143_v57 = vld [vmem:[%s4616_s3 + $0xc0] ss:$16 sps:$4 sm:$0xff]   ;;  %v3151_v58 = vld [vmem:[%s4616_s3 + $0xe4] ss:$16 sps:$4 sm:$0xff]  }
  0x14   :  { %265 = vmatprep.subr.bf16.mxu0 %v3074_v16  ;;  %306 = vmatprep.subr.bf16.mxu1 %v3098_v28  ;;  %v3134_v59 = vld [vmem:[%s4616_s3 + $0x88] ss:$16 sps:$4 sm:$0xff]   ;;  %v3142_v60 = vld [vmem:[%s4616_s3 + $0xac] ss:$16 sps:$4 sm:$0xff]   ;;  %v3149_v61 = vld [vmem:[%s4616_s3 + $0xe0] ss:$16 sps:$4 sm:$0xff]  }
  0x15   :  { %v3157_v62 = vld [vmem:[%s4616_s3 + $0x104] ss:$16 sps:$4 sm:$0xff]   ;;  %v3140_v63 = vld [vmem:[%s4616_s3 + $0xa8] ss:$16 sps:$4 sm:$0xff]   ;;  %v3148_v0 = vld [vmem:[%s4616_s3 + $0xcc] ss:$16 sps:$4 sm:$0xff]  }
  0x16   :  { %v3155_v1 = vld [vmem:[%s4616_s3 + $0x100] ss:$16 sps:$4 sm:$0xff]   ;;  %v3163_v2 = vld [vmem:[%s4616_s3 + $0x124] ss:$16 sps:$4 sm:$0xff]   ;;  %v3146_v3 = vld [vmem:[%s4616_s3 + $0xc8] ss:$16 sps:$4 sm:$0xff]  }
  0x17   :  { %266 = vmatpush1.bf16.msra.mxu0 %v3076_v17  ;;  %307 = vmatpush1.bf16.msra.mxu1 %v3100_v31  ;;  %v3154_v4 = vld [vmem:[%s4616_s3 + $0xec] ss:$16 sps:$4 sm:$0xff]   ;;  %v3161_v5 = vld [vmem:[%s4616_s3 + $0x120] ss:$16 sps:$4 sm:$0xff]   ;;  %v3169_v6 = vld [vmem:[%s4616_s3 + $0x144] ss:$16 sps:$4 sm:$0xff]  }
  0x18   :  { %267 = vmatprep.subr.bf16.mxu0 %v3077_v20  ;;  %308 = vmatprep.subr.bf16.mxu1 %v3101_v32  ;;  %v3152_v7 = vld [vmem:[%s4616_s3 + $0xe8] ss:$16 sps:$4 sm:$0xff]   ;;  %v3160_v8 = vld [vmem:[%s4616_s3 + $0x10c] ss:$16 sps:$4 sm:$0xff]   ;;  %v3167_v9 = vld [vmem:[%s4616_s3 + $0x140] ss:$16 sps:$4 sm:$0xff]  }
  0x19   :  { %v3175_v10 = vld [vmem:[%s4616_s3 + $0x164] ss:$16 sps:$4 sm:$0xff]   ;;  %v3158_v11 = vld [vmem:[%s4616_s3 + $0x108] ss:$16 sps:$4 sm:$0xff]   ;;  %v3166_v12 = vld [vmem:[%s4616_s3 + $0x12c] ss:$16 sps:$4 sm:$0xff]  }
  0x1a   :  { %v3173_v13 = vld [vmem:[%s4616_s3 + $0x160] ss:$16 sps:$4 sm:$0xff]   ;;  %v3181_v14 = vld [vmem:[%s4616_s3 + $0x184] ss:$16 sps:$4 sm:$0xff]   ;;  %v3164_v15 = vld [vmem:[%s4616_s3 + $0x128] ss:$16 sps:$4 sm:$0xff]  }
  0x1b   :  { %268 = vmatpush1.bf16.msra.mxu0 %v3079_v21  ;;  %309 = vmatpush1.bf16.msra.mxu1 %v3103_v35  ;;  %v3172_v16 = vld [vmem:[%s4616_s3 + $0x14c] ss:$16 sps:$4 sm:$0xff]   ;;  %v3179_v17 = vld [vmem:[%s4616_s3 + $0x180] ss:$16 sps:$4 sm:$0xff]   ;;  %v3187_v18 = vld [vmem:[%s4616_s3 + $0x1a4] ss:$16 sps:$4 sm:$0xff]  }
  0x1c   :  { %269 = vmatprep.subr.bf16.mxu0 %v3080_v24  ;;  %310 = vmatprep.subr.bf16.mxu1 %v3104_v36  ;;  %v3170_v19 = vld [vmem:[%s4616_s3 + $0x148] ss:$16 sps:$4 sm:$0xff]   ;;  %v3178_v20 = vld [vmem:[%s4616_s3 + $0x16c] ss:$16 sps:$4 sm:$0xff]   ;;  %v3185_v21 = vld [vmem:[%s4616_s3 + $0x1a0] ss:$16 sps:$4 sm:$0xff]  }
  0x1d   :  { %v3176_v22 = vld [vmem:[%s4616_s3 + $0x168] ss:$16 sps:$4 sm:$0xff]   ;;  %v3184_v23 = vld [vmem:[%s4616_s3 + $0x18c] ss:$16 sps:$4 sm:$0xff]   ;;  %v3193_v27 = vld [vmem:[%s4616_s3 + $0x1c4] ss:$16 sps:$4 sm:$0xff]  }
  0x1e   :  { %v3182_v24 = vld [vmem:[%s4616_s3 + $0x188] ss:$16 sps:$4 sm:$0xff]   ;;  %v3196_v28 = vld [vmem:[%s4616_s3 + $0x1cc] ss:$16 sps:$4 sm:$0xff]   ;;  %v3199_v31 = vld [vmem:[%s4616_s3 + $0x1e4] ss:$16 sps:$4 sm:$0xff]  }
  0x1f   :  { %270 = vmatpush1.bf16.msra.mxu0 %v3082_v25  ;;  %311 = vmatpush1.bf16.msra.mxu1 %v3106_v39  ;;  %v3190_v25 = vld [vmem:[%s4616_s3 + $0x1ac] ss:$16 sps:$4 sm:$0xff]   ;;  %v3188_v26 = vld [vmem:[%s4616_s3 + $0x1a8] ss:$16 sps:$4 sm:$0xff]   ;;  %v3205_v35 = vld [vmem:[%s4616_s3 + $0x204] ss:$16 sps:$4 sm:$0xff]  }
  0x20   :  { %1135 = vmatprep.subr.bf16.mxu0 %v3109_v29  ;;  %1217 = vmatprep.subr.bf16.mxu1 %v3112_v40  ;;  %v3191_v29 = vld [vmem:[%s4616_s3 + $0x1c0] ss:$16 sps:$4 sm:$0xff]   ;;  %v3202_v32 = vld [vmem:[%s4616_s3 + $0x1ec] ss:$16 sps:$4 sm:$0xff]  }
  0x21   :  { %v3208_v36 = vld [vmem:[%s4616_s3 + $0x20c] ss:$16 sps:$4 sm:$0xff]   ;;  %v3889_v40 = vld [vmem:[%s4619_s2] sm:$0xf] }
  0x22   :  { %288 = vmatmul.mubr.bf16.vlgmr.msra.gmra.mrb[0].mxu0 %v40_v30  ;;  %329 = vmatmul.mubr.bf16.vlgmr.msra.gmra.mrb[0].mxu1 %v40_v30  ;;  %v3194_v30 = vld [vmem:[%s4616_s3 + $0x1c8] ss:$16 sps:$4 sm:$0xff]  }
  0x23   :  { %1136 = vmatpush1.bf16.msra.mxu0 %v3107_v33  ;;  %1218 = vmatpush1.bf16.msra.mxu1 %v3110_v43  ;;  %v3197_v33 = vld [vmem:[%s4616_s3 + $0x1e0] ss:$16 sps:$4 sm:$0xff]  }
  0x24   :  { %1137 = vmatprep.subr.bf16.mxu0 %v3115_v34  ;;  %1219 = vmatprep.subr.bf16.mxu1 %v3118_v44  ;;  %v3200_v34 = vld [vmem:[%s4616_s3 + $0x1e8] ss:$16 sps:$4 sm:$0xff]  }
  0x27   :  { %1138 = vmatpush1.bf16.msra.mxu0 %v3113_v37  ;;  %1220 = vmatpush1.bf16.msra.mxu1 %v3116_v47  ;;  %v75_v37 = vlaneseq }
  0x28   :  { %1139 = vmatprep.subr.bf16.mxu0 %v3121_v38  ;;  %1221 = vmatprep.subr.bf16.mxu1 %v3124_v48 }
  0x29   :  { %v3881_v38 = vshrl.u32 %v75_v37, 7  ;;  %v3265_v37 = vld [vmem:[%s4616_s3 + $0x344] ss:$16 sps:$4 sm:$0xff]  }
  0x2b   :  { %1140 = vmatpush1.bf16.msra.mxu0 %v3119_v41  ;;  %1222 = vmatpush1.bf16.msra.mxu1 %v3122_v51  ;;  %v3884_v39 = vsub.s32 0, %v3881_v38  ;;  %v3892_v41 = vsub.s32 1, %v3881_v38 }
  0x2c   :  { %1141 = vmatprep.subr.bf16.mxu0 %v3127_v42  ;;  %1223 = vmatprep.subr.bf16.mxu1 %v3130_v52  ;;  %v3203_v52 = vld [vmem:[%s4616_s3 + $0x200] ss:$16 sps:$4 sm:$0xff]  }
  0x2d   :  { %v78_v42 = vrot.slane %v3889_v40, %v3884_v39  ;;  %v82_v43 = vrot.slane %v3889_v40, %v3892_v41 }
  0x2f   :  { %1142 = vmatpush1.bf16.msra.mxu0 %v3125_v45  ;;  %1224 = vmatpush1.bf16.msra.mxu1 %v3128_v55  ;;  %v3908_v55 = vsub.s32 3, %v3881_v38 }
  0x30   :  { %1143 = vmatprep.subr.bf16.mxu0 %v3133_v46  ;;  %1225 = vmatprep.subr.bf16.mxu1 %v3136_v56 }
  0x33   :  { %1144 = vmatpush1.bf16.msra.mxu0 %v3131_v49  ;;  %1226 = vmatpush1.bf16.msra.mxu1 %v3134_v59  ;;  %v90_v59 = vrot.slane %v3889_v40, %v3908_v55 }
  0x34   :  { %1145 = vmatprep.subr.bf16.mxu0 %v3139_v50  ;;  %1227 = vmatprep.subr.bf16.mxu1 %v3142_v60  ;;  %v3209_v60 = vld [vmem:[%s4616_s3 + $0x220] ss:$16 sps:$4 sm:$0xff]  }
  0x37   :  { %1146 = vmatpush1.bf16.msra.mxu0 %v3137_v53  ;;  %1228 = vmatpush1.bf16.msra.mxu1 %v3140_v63  ;;  %v3206_v53 = vld [vmem:[%s4616_s3 + $0x208] ss:$16 sps:$4 sm:$0xff]   ;;  %v3220_v63 = vld [vmem:[%s4616_s3 + $0x24c] ss:$16 sps:$4 sm:$0xff]  }
  0x38   :  { %1147 = vmatprep.subr.bf16.mxu0 %v3145_v54  ;;  %1229 = vmatprep.subr.bf16.mxu1 %v3148_v0  ;;  %v3211_v54 = vld [vmem:[%s4616_s3 + $0x224] ss:$16 sps:$4 sm:$0xff]  }
  0x3b   :  { %1148 = vmatpush1.bf16.msra.mxu0 %v3143_v57  ;;  %1230 = vmatpush1.bf16.msra.mxu1 %v3146_v3 }
  0x3c   :  { %1149 = vmatprep.subr.bf16.mxu0 %v3151_v58  ;;  %1231 = vmatprep.subr.bf16.mxu1 %v3154_v4  ;;  %v3214_v58 = vld [vmem:[%s4616_s3 + $0x22c] ss:$16 sps:$4 sm:$0xff]   ;;  %v3215_v4 = vld [vmem:[%s4616_s3 + $0x240] ss:$16 sps:$4 sm:$0xff]  }
  0x3f   :  { %1150 = vmatpush1.bf16.msra.mxu0 %v3149_v61  ;;  %1232 = vmatpush1.bf16.msra.mxu1 %v3152_v7  ;;  %v3212_v61 = vld [vmem:[%s4616_s3 + $0x228] ss:$16 sps:$4 sm:$0xff]   ;;  %v3223_v7 = vld [vmem:[%s4616_s3 + $0x264] ss:$16 sps:$4 sm:$0xff]  }
  0x40   :  { %1151 = vmatprep.subr.bf16.mxu0 %v3157_v62  ;;  %1233 = vmatprep.subr.bf16.mxu1 %v3160_v8  ;;  %v3217_v62 = vld [vmem:[%s4616_s3 + $0x244] ss:$16 sps:$4 sm:$0xff]   ;;  %v3226_v8 = vld [vmem:[%s4616_s3 + $0x26c] ss:$16 sps:$4 sm:$0xff]  }
  0x43   :  { %1152 = vmatpush1.bf16.msra.mxu0 %v3155_v1  ;;  %1234 = vmatpush1.bf16.msra.mxu1 %v3158_v11  ;;  %v3221_v11 = vld [vmem:[%s4616_s3 + $0x260] ss:$16 sps:$4 sm:$0xff]  }
  0x44   :  { %1153 = vmatprep.subr.bf16.mxu0 %v3163_v2  ;;  %1235 = vmatprep.subr.bf16.mxu1 %v3166_v12  ;;  %v3224_v12 = vld [vmem:[%s4616_s3 + $0x268] ss:$16 sps:$4 sm:$0xff]  }
  0x47   :  { %1154 = vmatpush1.bf16.msra.mxu0 %v3161_v5  ;;  %1236 = vmatpush1.bf16.msra.mxu1 %v3164_v15  ;;  %v3218_v5 = vld [vmem:[%s4616_s3 + $0x248] ss:$16 sps:$4 sm:$0xff]   ;;  %v3227_v15 = vld [vmem:[%s4616_s3 + $0x280] ss:$16 sps:$4 sm:$0xff]  }
  0x48   :  { %1155 = vmatprep.subr.bf16.mxu0 %v3169_v6  ;;  %1237 = vmatprep.subr.bf16.mxu1 %v3172_v16  ;;  %v3230_v16 = vld [vmem:[%s4616_s3 + $0x288] ss:$16 sps:$4 sm:$0xff]  }
  0x4b   :  { %1156 = vmatpush1.bf16.msra.mxu0 %v3167_v9  ;;  %1238 = vmatpush1.bf16.msra.mxu1 %v3170_v19  ;;  %v3233_v19 = vld [vmem:[%s4616_s3 + $0x2a0] ss:$16 sps:$4 sm:$0xff]  }
  0x4c   :  { %1157 = vmatprep.subr.bf16.mxu0 %v3175_v10  ;;  %1239 = vmatprep.subr.bf16.mxu1 %v3178_v20  ;;  %v3236_v20 = vld [vmem:[%s4616_s3 + $0x2a8] ss:$16 sps:$4 sm:$0xff]  }
  0x4f   :  { %1158 = vmatpush1.bf16.msra.mxu0 %v3173_v13  ;;  %1240 = vmatpush1.bf16.msra.mxu1 %v3176_v22  ;;  %v3229_v13 = vld [vmem:[%s4616_s3 + $0x284] ss:$16 sps:$4 sm:$0xff]   ;;  %v3244_v22 = vld [vmem:[%s4616_s3 + $0x2cc] ss:$16 sps:$4 sm:$0xff]  }
  0x50   :  { %1159 = vmatprep.subr.bf16.mxu0 %v3181_v14  ;;  %1241 = vmatprep.subr.bf16.mxu1 %v3184_v23  ;;  %v3232_v14 = vld [vmem:[%s4616_s3 + $0x28c] ss:$16 sps:$4 sm:$0xff]   ;;  %v3239_v23 = vld [vmem:[%s4616_s3 + $0x2c0] ss:$16 sps:$4 sm:$0xff]  }
  0x53   :  { %1160 = vmatpush1.bf16.msra.mxu0 %v3179_v17  ;;  %1242 = vmatpush1.bf16.msra.mxu1 %v3182_v24  ;;  %v3235_v17 = vld [vmem:[%s4616_s3 + $0x2a4] ss:$16 sps:$4 sm:$0xff]   ;;  %v3242_v24 = vld [vmem:[%s4616_s3 + $0x2c8] ss:$16 sps:$4 sm:$0xff]  }
  0x54   :  { %1161 = vmatprep.subr.bf16.mxu0 %v3187_v18  ;;  %1243 = vmatprep.subr.bf16.mxu1 %v3190_v25  ;;  %v3238_v18 = vld [vmem:[%s4616_s3 + $0x2ac] ss:$16 sps:$4 sm:$0xff]   ;;  %v3247_v25 = vld [vmem:[%s4616_s3 + $0x2e4] ss:$16 sps:$4 sm:$0xff]  }
  0x57   :  { %1162 = vmatpush1.bf16.msra.mxu0 %v3185_v21  ;;  %1244 = vmatpush1.bf16.msra.mxu1 %v3188_v26  ;;  %v3241_v21 = vld [vmem:[%s4616_s3 + $0x2c4] ss:$16 sps:$4 sm:$0xff]   ;;  %v3250_v26 = vld [vmem:[%s4616_s3 + $0x2ec] ss:$16 sps:$4 sm:$0xff]  }
  0x58   :  { %1163 = vmatprep.subr.bf16.mxu0 %v3193_v27  ;;  %1245 = vmatprep.subr.bf16.mxu1 %v3196_v28  ;;  %v3245_v27 = vld [vmem:[%s4616_s3 + $0x2e0] ss:$16 sps:$4 sm:$0xff]   ;;  %v3248_v28 = vld [vmem:[%s4616_s3 + $0x2e8] ss:$16 sps:$4 sm:$0xff]  }
  0x5b   :  { %1164 = vmatpush1.bf16.msra.mxu0 %v3191_v29  ;;  %1246 = vmatpush1.bf16.msra.mxu1 %v3194_v30  ;;  %v3253_v29 = vld [vmem:[%s4616_s3 + $0x304] ss:$16 sps:$4 sm:$0xff]   ;;  %v3256_v30 = vld [vmem:[%s4616_s3 + $0x30c] ss:$16 sps:$4 sm:$0xff]  }
  0x5c   :  { %1165 = vmatprep.subr.bf16.mxu0 %v3199_v31  ;;  %1247 = vmatprep.subr.bf16.mxu1 %v3202_v32  ;;  %v3251_v31 = vld [vmem:[%s4616_s3 + $0x300] ss:$16 sps:$4 sm:$0xff]   ;;  %v3254_v32 = vld [vmem:[%s4616_s3 + $0x308] ss:$16 sps:$4 sm:$0xff]  }
  0x5f   :  { %1166 = vmatpush1.bf16.msra.mxu0 %v3197_v33  ;;  %1248 = vmatpush1.bf16.msra.mxu1 %v3200_v34  ;;  %v3259_v33 = vld [vmem:[%s4616_s3 + $0x324] ss:$16 sps:$4 sm:$0xff]   ;;  %v3262_v34 = vld [vmem:[%s4616_s3 + $0x32c] ss:$16 sps:$4 sm:$0xff]  }
  0x60   :  { %1176 = vmatprep.subr.bf16.mxu0 %v3205_v35  ;;  %1258 = vmatprep.subr.bf16.mxu1 %v3208_v36  ;;  %v3257_v35 = vld [vmem:[%s4616_s3 + $0x320] ss:$16 sps:$4 sm:$0xff]   ;;  %v3260_v36 = vld [vmem:[%s4616_s3 + $0x328] ss:$16 sps:$4 sm:$0xff]  }
  0xf5   :  { %v289_v44 = vpop.f32.mrb[0].mxu0  ;;  %v3927_v0 = vpop.f32.mrb[0].mxu1 }
  0xf6   :  { %v290_v45 = vadd.f32 %v289_v44, %v78_v42  ;;  %v291_v46 = vpop.f32.mrb[1].mxu0  ;;  %v332_v1 = vpop.f32.mrb[1].mxu1  ;;  %v3268_v42 = vld [vmem:[%s4616_s3 + $0x34c] ss:$16 sps:$4 sm:$0xff]   ;;  %v3266_v44 = vld [vmem:[%s4616_s3 + $0x348] ss:$16 sps:$4 sm:$0xff]  }
  0xf7   :  { %v292_v47 = vadd.f32 %v291_v46, %v82_v43  ;;  %v293_v48 = vpop.f32.mrb[2].mxu0  ;;  %v333_v2 = vadd.f32 %v332_v1, %v90_v59  ;;  %v334_v3 = vpop.f32.mrb[2].mxu1  ;;  %v3263_v43 = vld [vmem:[%s4616_s3 + $0x340] ss:$16 sps:$4 sm:$0xff]   ;;  %v3274_v46 = vld [vmem:[%s4616_s3 + $0x36c] ss:$16 sps:$4 sm:$0xff]  }
  0xf8   :  { %v337_v49 = vmax.f32 %v290_v45, 0.0  ;;  %v294_v50 = vpop.f32.mrb[3].mxu0  ;;  %v335_v6 = vpop.f32.mrb[3].mxu1  ;;  %v3271_v45 = vld [vmem:[%s4616_s3 + $0x364] ss:$16 sps:$4 sm:$0xff]  }
  0xf9   :  { %v338_v51 = vmax.f32 %v292_v47, 0.0  ;;  %v340_v9 = vmax.f32 %v333_v2, 0.0  ;;  %v3269_v47 = vld [vmem:[%s4616_s3 + $0x360] ss:$16 sps:$4 sm:$0xff]   ;;  %v3272_v48 = vld [vmem:[%s4616_s3 + $0x368] ss:$16 sps:$4 sm:$0xff]  }
  0xfa   :  { %v341_v57 = vpack.c.bf16 %v337_v49, %v337_v49  ;;  %v3277_v49 = vld [vmem:[%s4616_s3 + $0x384] ss:$16 sps:$4 sm:$0xff]   ;;  %v3280_v50 = vld [vmem:[%s4616_s3 + $0x38c] ss:$16 sps:$4 sm:$0xff]   ;;  %v3293_v2 = vld [vmem:[%s4616_s3 + $0x3e0] ss:$16 sps:$4 sm:$0xff]  }
  0xfb   :  { %v342_v56 = vpack.c.bf16 %v338_v51, %v338_v51  ;;  %v344_v10 = vpack.c.bf16 %v340_v9, %v340_v9  ;;  %v3275_v51 = vld [vmem:[%s4616_s3 + $0x380] ss:$16 sps:$4 sm:$0xff]   ;;  %v3289_v59 = vld [vmem:[%s4616_s3 + $0x3c4] ss:$16 sps:$4 sm:$0xff]   ;;  %v3298_v1 = vld [vmem:[%s4616_s3 + $0x3ec] ss:$16 sps:$4 sm:$0xff]  }
  0xfc   :  { %v3299_v6 = vld [vmem:[%s4618_s5] ss:$16 sps:$4 sm:$0xff]   ;;  %v3307_v9 = vld [vmem:[%s4618_s5 + $0x24] ss:$16 sps:$4 sm:$0xff]  }
  0xfd   :  { %1167 = vmatprep.mubr.bf16.mxu0 %v342_v56  ;;  %1249 = vmatprep.mubr.bf16.mxu1 %v342_v56  ;;  %v3286_v56 = vld [vmem:[%s4616_s3 + $0x3ac] ss:$16 sps:$4 sm:$0xff]  }
  0xfe   :  { %1168 = vmatmul.mubr.bf16.vlgmr.msra.gmra.mrb[4].mxu0 %v341_v57  ;;  %1250 = vmatmul.mubr.bf16.vlgmr.msra.gmra.mrb[4].mxu1 %v341_v57  ;;  %v3281_v57 = vld [vmem:[%s4616_s3 + $0x3a0] ss:$16 sps:$4 sm:$0xff]  }
  0xff   :  { %1177 = vmatpush1.bf16.msra.mxu0 %v3203_v52  ;;  %1259 = vmatpush1.bf16.msra.mxu1 %v3206_v53  ;;  %v3278_v52 = vld [vmem:[%s4616_s3 + $0x388] ss:$16 sps:$4 sm:$0xff]   ;;  %v4056_v53 = vsub.s32 2, %v3881_v38 }
 0x100   :  { %1178 = vmatprep.subr.bf16.mxu0 %v3211_v54  ;;  %1260 = vmatprep.subr.bf16.mxu1 %v3214_v58  ;;  %v3283_v54 = vld [vmem:[%s4616_s3 + $0x3a4] ss:$16 sps:$4 sm:$0xff]   ;;  %v3284_v58 = vld [vmem:[%s4616_s3 + $0x3a8] ss:$16 sps:$4 sm:$0xff]  }
 0x101   :  { %1208 = vmatprep.mubr.bf16.mxu0 %v344_v10  ;;  %1290 = vmatprep.mubr.bf16.mxu1 %v344_v10  ;;  %v86_v38 = vrot.slane %v3889_v40, %v4056_v53  ;;  %v3290_v40 = vld [vmem:[%s4616_s3 + $0x3c8] ss:$16 sps:$4 sm:$0xff]   ;;  %v3310_v10 = vld [vmem:[%s4618_s5 + $0x2c] ss:$16 sps:$4 sm:$0xff]  }
 0x103   :  { %1179 = vmatpush1.bf16.msra.mxu0 %v3209_v60  ;;  %1261 = vmatpush1.bf16.msra.mxu1 %v3212_v61  ;;  %v3292_v60 = vld [vmem:[%s4616_s3 + $0x3cc] ss:$16 sps:$4 sm:$0xff]   ;;  %v3287_v61 = vld [vmem:[%s4616_s3 + $0x3c0] ss:$16 sps:$4 sm:$0xff]  }
 0x104   :  { %1180 = vmatprep.subr.bf16.mxu0 %v3217_v62  ;;  %1262 = vmatprep.subr.bf16.mxu1 %v3220_v63  ;;  %v331_v62 = vadd.f32 %v3927_v0, %v86_v38  ;;  %v3295_v63 = vld [vmem:[%s4616_s3 + $0x3e4] ss:$16 sps:$4 sm:$0xff]   ;;  %v3296_v0 = vld [vmem:[%s4616_s3 + $0x3e8] ss:$16 sps:$4 sm:$0xff]  }
 0x105   :  { %v3373_v38 = vld [vmem:[%s4618_s5 + $0x184] ss:$16 sps:$4 sm:$0xff]  }
 0x106   :  { %v339_v3 = vmax.f32 %v331_v62, 0.0  ;;  %v3382_v62 = vld [vmem:[%s4618_s5 + $0x1ac] ss:$16 sps:$4 sm:$0xff]  }
 0x107   :  { %1181 = vmatpush1.bf16.msra.mxu0 %v3215_v4  ;;  %1263 = vmatpush1.bf16.msra.mxu1 %v3218_v5  ;;  %v3301_v4 = vld [vmem:[%s4618_s5 + $0x4] ss:$16 sps:$4 sm:$0xff]   ;;  %v3304_v5 = vld [vmem:[%s4618_s5 + $0xc] ss:$16 sps:$4 sm:$0xff]  }
 0x108   :  { %1182 = vmatprep.subr.bf16.mxu0 %v3223_v7  ;;  %1264 = vmatprep.subr.bf16.mxu1 %v3226_v8  ;;  %v3302_v7 = vld [vmem:[%s4618_s5 + $0x8] ss:$16 sps:$4 sm:$0xff]   ;;  %v343_v8 = vpack.c.bf16 %v339_v3, %v339_v3  ;;  %v3383_v3 = vld [vmem:[%s4618_s5 + $0x1c0] ss:$16 sps:$4 sm:$0xff]  }
 0x10b   :  { %1183 = vmatpush1.bf16.msra.mxu0 %v3221_v11  ;;  %1265 = vmatpush1.bf16.msra.mxu1 %v3224_v12  ;;  %v3305_v11 = vld [vmem:[%s4618_s5 + $0x20] ss:$16 sps:$4 sm:$0xff]   ;;  %v3308_v12 = vld [vmem:[%s4618_s5 + $0x28] ss:$16 sps:$4 sm:$0xff]  }
 0x10c   :  { %1184 = vmatprep.subr.bf16.mxu0 %v3229_v13  ;;  %1266 = vmatprep.subr.bf16.mxu1 %v3232_v14  ;;  %v3313_v13 = vld [vmem:[%s4618_s5 + $0x44] ss:$16 sps:$4 sm:$0xff]   ;;  %v3316_v14 = vld [vmem:[%s4618_s5 + $0x4c] ss:$16 sps:$4 sm:$0xff]  }
 0x10f   :  { %1185 = vmatpush1.bf16.msra.mxu0 %v3227_v15  ;;  %1267 = vmatpush1.bf16.msra.mxu1 %v3230_v16  ;;  %v3311_v15 = vld [vmem:[%s4618_s5 + $0x40] ss:$16 sps:$4 sm:$0xff]   ;;  %v3314_v16 = vld [vmem:[%s4618_s5 + $0x48] ss:$16 sps:$4 sm:$0xff]  }
 0x110   :  { %1186 = vmatprep.subr.bf16.mxu0 %v3235_v17  ;;  %1268 = vmatprep.subr.bf16.mxu1 %v3238_v18  ;;  %v3319_v17 = vld [vmem:[%s4618_s5 + $0x64] ss:$16 sps:$4 sm:$0xff]   ;;  %v3322_v18 = vld [vmem:[%s4618_s5 + $0x6c] ss:$16 sps:$4 sm:$0xff]  }
 0x113   :  { %1187 = vmatpush1.bf16.msra.mxu0 %v3233_v19  ;;  %1269 = vmatpush1.bf16.msra.mxu1 %v3236_v20  ;;  %v3317_v19 = vld [vmem:[%s4618_s5 + $0x60] ss:$16 sps:$4 sm:$0xff]   ;;  %v3320_v20 = vld [vmem:[%s4618_s5 + $0x68] ss:$16 sps:$4 sm:$0xff]  }
 0x114   :  { %1188 = vmatprep.subr.bf16.mxu0 %v3241_v21  ;;  %1270 = vmatprep.subr.bf16.mxu1 %v3244_v22  ;;  %v3325_v21 = vld [vmem:[%s4618_s5 + $0x84] ss:$16 sps:$4 sm:$0xff]   ;;  %v3328_v22 = vld [vmem:[%s4618_s5 + $0x8c] ss:$16 sps:$4 sm:$0xff]  }
 0x117   :  { %1189 = vmatpush1.bf16.msra.mxu0 %v3239_v23  ;;  %1271 = vmatpush1.bf16.msra.mxu1 %v3242_v24  ;;  %v3323_v23 = vld [vmem:[%s4618_s5 + $0x80] ss:$16 sps:$4 sm:$0xff]   ;;  %v3326_v24 = vld [vmem:[%s4618_s5 + $0x88] ss:$16 sps:$4 sm:$0xff]  }
 0x118   :  { %1190 = vmatprep.subr.bf16.mxu0 %v3247_v25  ;;  %1272 = vmatprep.subr.bf16.mxu1 %v3250_v26  ;;  %v3331_v25 = vld [vmem:[%s4618_s5 + $0xa4] ss:$16 sps:$4 sm:$0xff]   ;;  %v3334_v26 = vld [vmem:[%s4618_s5 + $0xac] ss:$16 sps:$4 sm:$0xff]  }
 0x11b   :  { %1191 = vmatpush1.bf16.msra.mxu0 %v3245_v27  ;;  %1273 = vmatpush1.bf16.msra.mxu1 %v3248_v28  ;;  %v3329_v27 = vld [vmem:[%s4618_s5 + $0xa0] ss:$16 sps:$4 sm:$0xff]   ;;  %v3332_v28 = vld [vmem:[%s4618_s5 + $0xa8] ss:$16 sps:$4 sm:$0xff]  }
 0x11c   :  { %1192 = vmatprep.subr.bf16.mxu0 %v3253_v29  ;;  %1274 = vmatprep.subr.bf16.mxu1 %v3256_v30  ;;  %v3337_v29 = vld [vmem:[%s4618_s5 + $0xc4] ss:$16 sps:$4 sm:$0xff]   ;;  %v3340_v30 = vld [vmem:[%s4618_s5 + $0xcc] ss:$16 sps:$4 sm:$0xff]  }
 0x11f   :  { %1193 = vmatpush1.bf16.msra.mxu0 %v3251_v31  ;;  %1275 = vmatpush1.bf16.msra.mxu1 %v3254_v32  ;;  %v3335_v31 = vld [vmem:[%s4618_s5 + $0xc0] ss:$16 sps:$4 sm:$0xff]   ;;  %v3338_v32 = vld [vmem:[%s4618_s5 + $0xc8] ss:$16 sps:$4 sm:$0xff]  }
 0x120   :  { %1194 = vmatprep.subr.bf16.mxu0 %v3259_v33  ;;  %1276 = vmatprep.subr.bf16.mxu1 %v3262_v34  ;;  %v3343_v33 = vld [vmem:[%s4618_s5 + $0xe4] ss:$16 sps:$4 sm:$0xff]   ;;  %v3346_v34 = vld [vmem:[%s4618_s5 + $0xec] ss:$16 sps:$4 sm:$0xff]  }
 0x123   :  { %1195 = vmatpush1.bf16.msra.mxu0 %v3257_v35  ;;  %1277 = vmatpush1.bf16.msra.mxu1 %v3260_v36  ;;  %v3341_v35 = vld [vmem:[%s4618_s5 + $0xe0] ss:$16 sps:$4 sm:$0xff]   ;;  %v3344_v36 = vld [vmem:[%s4618_s5 + $0xe8] ss:$16 sps:$4 sm:$0xff]  }
 0x124   :  { %1196 = vmatprep.subr.bf16.mxu0 %v3265_v37  ;;  %1278 = vmatprep.subr.bf16.mxu1 %v3268_v42  ;;  %v3349_v37 = vld [vmem:[%s4618_s5 + $0x104] ss:$16 sps:$4 sm:$0xff]   ;;  %v3352_v42 = vld [vmem:[%s4618_s5 + $0x10c] ss:$16 sps:$4 sm:$0xff]  }
 0x127   :  { %1197 = vmatpush1.bf16.msra.mxu0 %v3263_v43  ;;  %1279 = vmatpush1.bf16.msra.mxu1 %v3266_v44  ;;  %v3347_v43 = vld [vmem:[%s4618_s5 + $0x100] ss:$16 sps:$4 sm:$0xff]   ;;  %v3350_v44 = vld [vmem:[%s4618_s5 + $0x108] ss:$16 sps:$4 sm:$0xff]  }
 0x128   :  { %1198 = vmatprep.subr.bf16.mxu0 %v3271_v45  ;;  %1280 = vmatprep.subr.bf16.mxu1 %v3274_v46  ;;  %v3355_v45 = vld [vmem:[%s4618_s5 + $0x124] ss:$16 sps:$4 sm:$0xff]   ;;  %v3358_v46 = vld [vmem:[%s4618_s5 + $0x12c] ss:$16 sps:$4 sm:$0xff]  }
 0x12b   :  { %1199 = vmatpush1.bf16.msra.mxu0 %v3269_v47  ;;  %1281 = vmatpush1.bf16.msra.mxu1 %v3272_v48  ;;  %v3353_v47 = vld [vmem:[%s4618_s5 + $0x120] ss:$16 sps:$4 sm:$0xff]   ;;  %v3356_v48 = vld [vmem:[%s4618_s5 + $0x128] ss:$16 sps:$4 sm:$0xff]  }
 0x12c   :  { %1200 = vmatprep.subr.bf16.mxu0 %v3277_v49  ;;  %1282 = vmatprep.subr.bf16.mxu1 %v3280_v50  ;;  %v3361_v49 = vld [vmem:[%s4618_s5 + $0x144] ss:$16 sps:$4 sm:$0xff]   ;;  %v3364_v50 = vld [vmem:[%s4618_s5 + $0x14c] ss:$16 sps:$4 sm:$0xff]  }
 0x12f   :  { %1201 = vmatpush1.bf16.msra.mxu0 %v3275_v51  ;;  %1283 = vmatpush1.bf16.msra.mxu1 %v3278_v52  ;;  %v3359_v51 = vld [vmem:[%s4618_s5 + $0x140] ss:$16 sps:$4 sm:$0xff]   ;;  %v3362_v52 = vld [vmem:[%s4618_s5 + $0x148] ss:$16 sps:$4 sm:$0xff]  }
 0x130   :  { %1202 = vmatprep.subr.bf16.mxu0 %v3283_v54  ;;  %1284 = vmatprep.subr.bf16.mxu1 %v3286_v56  ;;  %v3367_v54 = vld [vmem:[%s4618_s5 + $0x164] ss:$16 sps:$4 sm:$0xff]   ;;  %v3370_v56 = vld [vmem:[%s4618_s5 + $0x16c] ss:$16 sps:$4 sm:$0xff]  }
 0x133   :  { %1203 = vmatpush1.bf16.msra.mxu0 %v3281_v57  ;;  %1285 = vmatpush1.bf16.msra.mxu1 %v3284_v58  ;;  %v3365_v57 = vld [vmem:[%s4618_s5 + $0x160] ss:$16 sps:$4 sm:$0xff]   ;;  %v3368_v58 = vld [vmem:[%s4618_s5 + $0x168] ss:$16 sps:$4 sm:$0xff]  }
 0x134   :  { %1204 = vmatprep.subr.bf16.mxu0 %v3289_v59  ;;  %1286 = vmatprep.subr.bf16.mxu1 %v3292_v60  ;;  %v3376_v59 = vld [vmem:[%s4618_s5 + $0x18c] ss:$16 sps:$4 sm:$0xff]   ;;  %v3371_v60 = vld [vmem:[%s4618_s5 + $0x180] ss:$16 sps:$4 sm:$0xff]  }
 0x137   :  { %1205 = vmatpush1.bf16.msra.mxu0 %v3287_v61  ;;  %1287 = vmatpush1.bf16.msra.mxu1 %v3290_v40  ;;  %v3374_v61 = vld [vmem:[%s4618_s5 + $0x188] ss:$16 sps:$4 sm:$0xff]   ;;  %v3379_v40 = vld [vmem:[%s4618_s5 + $0x1a4] ss:$16 sps:$4 sm:$0xff]  }
 0x138   :  { %1206 = vmatprep.subr.bf16.mxu0 %v3295_v63  ;;  %1288 = vmatprep.subr.bf16.mxu1 %v3298_v1  ;;  %v3377_v63 = vld [vmem:[%s4618_s5 + $0x1a0] ss:$16 sps:$4 sm:$0xff]   ;;  %v3380_v1 = vld [vmem:[%s4618_s5 + $0x1a8] ss:$16 sps:$4 sm:$0xff]  }
 0x13b   :  { %1207 = vmatpush1.bf16.msra.mxu0 %v3293_v2  ;;  %1289 = vmatpush1.bf16.msra.mxu1 %v3296_v0  ;;  %v3385_v2 = vld [vmem:[%s4618_s5 + $0x1c4] ss:$16 sps:$4 sm:$0xff]   ;;  %v3388_v0 = vld [vmem:[%s4618_s5 + $0x1cc] ss:$16 sps:$4 sm:$0xff]  }
 0x13c   :  { %2123 = vmatprep.subr.bf16.mxu0 %v3301_v4  ;;  %2205 = vmatprep.subr.bf16.mxu1 %v3304_v5  ;;  %v3386_v4 = vld [vmem:[%s4618_s5 + $0x1c8] ss:$16 sps:$4 sm:$0xff]   ;;  %v3391_v5 = vld [vmem:[%s4618_s5 + $0x1e4] ss:$16 sps:$4 sm:$0xff]  }
 0x13e   :  { %1209 = vmatmul.mubr.bf16.vlgmr.msra.gmra.mrb[4].mxu0 %v343_v8  ;;  %1291 = vmatmul.mubr.bf16.vlgmr.msra.gmra.mrb[4].mxu1 %v343_v8  ;;  %v3392_v8 = vld [vmem:[%s4618_s5 + $0x1e8] ss:$16 sps:$4 sm:$0xff]  }
 0x13f   :  { %2124 = vmatpush1.bf16.msra.mxu0 %v3299_v6  ;;  %2206 = vmatpush1.bf16.msra.mxu1 %v3302_v7  ;;  %v3394_v6 = vld [vmem:[%s4618_s5 + $0x1ec] ss:$16 sps:$4 sm:$0xff]   ;;  %v3389_v7 = vld [vmem:[%s4618_s5 + $0x1e0] ss:$16 sps:$4 sm:$0xff]  }
 0x140   :  { %2125 = vmatprep.subr.bf16.mxu0 %v3307_v9  ;;  %2207 = vmatprep.subr.bf16.mxu1 %v3310_v10  ;;  %v3397_v9 = vld [vmem:[%s4618_s5 + $0x204] ss:$16 sps:$4 sm:$0xff]   ;;  %v3400_v10 = vld [vmem:[%s4618_s5 + $0x20c] ss:$16 sps:$4 sm:$0xff]  }
 0x143   :  { %2126 = vmatpush1.bf16.msra.mxu0 %v3305_v11  ;;  %2208 = vmatpush1.bf16.msra.mxu1 %v3308_v12  ;;  %v473_v11 = vld [vmem:[%s4621_s4] sm:$0xf] }
 0x144   :  { %2127 = vmatprep.subr.bf16.mxu0 %v3313_v13  ;;  %2209 = vmatprep.subr.bf16.mxu1 %v3316_v14  ;;  %v478_v12 = vrot.slane %v473_v11, %v3884_v39  ;;  %v486_v13 = vrot.slane %v473_v11, %v4056_v53  ;;  %v1303_v14 = vld [vmem:[%s4622_s9] sm:$0xf] }
 0x147   :  { %2128 = vmatpush1.bf16.msra.mxu0 %v3311_v15  ;;  %2210 = vmatpush1.bf16.msra.mxu1 %v3314_v16  ;;  %v482_v15 = vrot.slane %v473_v11, %v3892_v41  ;;  %v490_v16 = vrot.slane %v473_v11, %v3908_v55  ;;  %v3442_v11 = vld [vmem:[%s4618_s5 + $0x2ec] ss:$16 sps:$4 sm:$0xff]  }
 0x148   :  { %2129 = vmatprep.subr.bf16.mxu0 %v3319_v17  ;;  %2211 = vmatprep.subr.bf16.mxu1 %v3322_v18 }
 0x14b   :  { %2130 = vmatpush1.bf16.msra.mxu0 %v3317_v19  ;;  %2212 = vmatpush1.bf16.msra.mxu1 %v3320_v20  ;;  %v1308_v20 = vrot.slane %v1303_v14, %v3884_v39 }
 0x14c   :  { %2131 = vmatprep.subr.bf16.mxu0 %v3325_v21  ;;  %2213 = vmatprep.subr.bf16.mxu1 %v3328_v22  ;;  %v1316_v22 = vrot.slane %v1303_v14, %v4056_v53 }
 0x14f   :  { %2132 = vmatpush1.bf16.msra.mxu0 %v3323_v23  ;;  %2214 = vmatpush1.bf16.msra.mxu1 %v3326_v24 }
 0x150   :  { %2133 = vmatprep.subr.bf16.mxu0 %v3331_v25  ;;  %2215 = vmatprep.subr.bf16.mxu1 %v3334_v26  ;;  %v1312_v26 = vrot.slane %v1303_v14, %v3892_v41 }
 0x153   :  { %2134 = vmatpush1.bf16.msra.mxu0 %v3329_v27  ;;  %2216 = vmatpush1.bf16.msra.mxu1 %v3332_v28 }
 0x154   :  { %2135 = vmatprep.subr.bf16.mxu0 %v3337_v29  ;;  %2217 = vmatprep.subr.bf16.mxu1 %v3340_v30 }
 0x157   :  { %2136 = vmatpush1.bf16.msra.mxu0 %v3335_v31  ;;  %2218 = vmatpush1.bf16.msra.mxu1 %v3338_v32  ;;  %v1320_v32 = vrot.slane %v1303_v14, %v3908_v55  ;;  %v3445_v14 = vld [vmem:[%s4618_s5 + $0x304] ss:$16 sps:$4 sm:$0xff]  }
 0x158   :  { %2137 = vmatprep.subr.bf16.mxu0 %v3343_v33  ;;  %2219 = vmatprep.subr.bf16.mxu1 %v3346_v34 }
 0x15b   :  { %2138 = vmatpush1.bf16.msra.mxu0 %v3341_v35  ;;  %2220 = vmatpush1.bf16.msra.mxu1 %v3344_v36 }
 0x15c   :  { %2139 = vmatprep.subr.bf16.mxu0 %v3349_v37  ;;  %2221 = vmatprep.subr.bf16.mxu1 %v3352_v42 }
 0x15f   :  { %2140 = vmatpush1.bf16.msra.mxu0 %v3347_v43  ;;  %2222 = vmatpush1.bf16.msra.mxu1 %v3350_v44 }
 0x160   :  { %2141 = vmatprep.subr.bf16.mxu0 %v3355_v45  ;;  %2223 = vmatprep.subr.bf16.mxu1 %v3358_v46  ;;  %v3395_v46 = vld [vmem:[%s4618_s5 + $0x200] ss:$16 sps:$4 sm:$0xff]  }
 0x163   :  { %2142 = vmatpush1.bf16.msra.mxu0 %v3353_v47  ;;  %2224 = vmatpush1.bf16.msra.mxu1 %v3356_v48  ;;  %v3398_v47 = vld [vmem:[%s4618_s5 + $0x208] ss:$16 sps:$4 sm:$0xff]  }
 0x164   :  { %2143 = vmatprep.subr.bf16.mxu0 %v3361_v49  ;;  %2225 = vmatprep.subr.bf16.mxu1 %v3364_v50  ;;  %v3403_v49 = vld [vmem:[%s4618_s5 + $0x224] ss:$16 sps:$4 sm:$0xff]   ;;  %v3406_v50 = vld [vmem:[%s4618_s5 + $0x22c] ss:$16 sps:$4 sm:$0xff]  }
 0x167   :  { %2144 = vmatpush1.bf16.msra.mxu0 %v3359_v51  ;;  %2226 = vmatpush1.bf16.msra.mxu1 %v3362_v52  ;;  %v3401_v52 = vld [vmem:[%s4618_s5 + $0x220] ss:$16 sps:$4 sm:$0xff]  }
 0x168   :  { %2145 = vmatprep.subr.bf16.mxu0 %v3367_v54  ;;  %2227 = vmatprep.subr.bf16.mxu1 %v3370_v56  ;;  %v3404_v54 = vld [vmem:[%s4618_s5 + $0x228] ss:$16 sps:$4 sm:$0xff]   ;;  %v3409_v56 = vld [vmem:[%s4618_s5 + $0x244] ss:$16 sps:$4 sm:$0xff]  }
 0x16b   :  { %2146 = vmatpush1.bf16.msra.mxu0 %v3365_v57  ;;  %2228 = vmatpush1.bf16.msra.mxu1 %v3368_v58  ;;  %v3412_v57 = vld [vmem:[%s4618_s5 + $0x24c] ss:$16 sps:$4 sm:$0xff]   ;;  %v3407_v58 = vld [vmem:[%s4618_s5 + $0x240] ss:$16 sps:$4 sm:$0xff]  }
 0x16c   :  { %2147 = vmatprep.subr.bf16.mxu0 %v3373_v38  ;;  %2229 = vmatprep.subr.bf16.mxu1 %v3376_v59  ;;  %v3410_v38 = vld [vmem:[%s4618_s5 + $0x248] ss:$16 sps:$4 sm:$0xff]   ;;  %v3415_v59 = vld [vmem:[%s4618_s5 + $0x264] ss:$16 sps:$4 sm:$0xff]  }
 0x16f   :  { %2148 = vmatpush1.bf16.msra.mxu0 %v3371_v60  ;;  %2230 = vmatpush1.bf16.msra.mxu1 %v3374_v61  ;;  %v3418_v60 = vld [vmem:[%s4618_s5 + $0x26c] ss:$16 sps:$4 sm:$0xff]   ;;  %v3413_v61 = vld [vmem:[%s4618_s5 + $0x260] ss:$16 sps:$4 sm:$0xff]  }
 0x170   :  { %2149 = vmatprep.subr.bf16.mxu0 %v3379_v40  ;;  %2231 = vmatprep.subr.bf16.mxu1 %v3382_v62  ;;  %v3416_v40 = vld [vmem:[%s4618_s5 + $0x268] ss:$16 sps:$4 sm:$0xff]   ;;  %v3421_v62 = vld [vmem:[%s4618_s5 + $0x284] ss:$16 sps:$4 sm:$0xff]  }
 0x173   :  { %2150 = vmatpush1.bf16.msra.mxu0 %v3377_v63  ;;  %2232 = vmatpush1.bf16.msra.mxu1 %v3380_v1  ;;  %v3424_v63 = vld [vmem:[%s4618_s5 + $0x28c] ss:$16 sps:$4 sm:$0xff]   ;;  %v3419_v1 = vld [vmem:[%s4618_s5 + $0x280] ss:$16 sps:$4 sm:$0xff]  }
 0x174   :  { %2151 = vmatprep.subr.bf16.mxu0 %v3385_v2  ;;  %2233 = vmatprep.subr.bf16.mxu1 %v3388_v0  ;;  %v3422_v2 = vld [vmem:[%s4618_s5 + $0x288] ss:$16 sps:$4 sm:$0xff]   ;;  %v3427_v0 = vld [vmem:[%s4618_s5 + $0x2a4] ss:$16 sps:$4 sm:$0xff]  }
 0x177   :  { %2152 = vmatpush1.bf16.msra.mxu0 %v3383_v3  ;;  %2234 = vmatpush1.bf16.msra.mxu1 %v3386_v4  ;;  %v3430_v3 = vld [vmem:[%s4618_s5 + $0x2ac] ss:$16 sps:$4 sm:$0xff]   ;;  %v3425_v4 = vld [vmem:[%s4618_s5 + $0x2a0] ss:$16 sps:$4 sm:$0xff]  }
 0x178   :  { %2153 = vmatprep.subr.bf16.mxu0 %v3391_v5  ;;  %2235 = vmatprep.subr.bf16.mxu1 %v3394_v6  ;;  %v3428_v5 = vld [vmem:[%s4618_s5 + $0x2a8] ss:$16 sps:$4 sm:$0xff]   ;;  %v3433_v6 = vld [vmem:[%s4618_s5 + $0x2c4] ss:$16 sps:$4 sm:$0xff]  }
 0x17b   :  { %2154 = vmatpush1.bf16.msra.mxu0 %v3389_v7  ;;  %2236 = vmatpush1.bf16.msra.mxu1 %v3392_v8  ;;  %v3436_v7 = vld [vmem:[%s4618_s5 + $0x2cc] ss:$16 sps:$4 sm:$0xff]   ;;  %v3431_v8 = vld [vmem:[%s4618_s5 + $0x2c0] ss:$16 sps:$4 sm:$0xff]  }
 0x17c   :  { %2164 = vmatprep.subr.bf16.mxu0 %v3397_v9  ;;  %2246 = vmatprep.subr.bf16.mxu1 %v3400_v10  ;;  %v3434_v9 = vld [vmem:[%s4618_s5 + $0x2c8] ss:$16 sps:$4 sm:$0xff]   ;;  %v3439_v10 = vld [vmem:[%s4618_s5 + $0x2e4] ss:$16 sps:$4 sm:$0xff]  }
 0x211   :  { %v1210_v17 = vpop.f32.mrb[4].mxu0  ;;  %v1292_v18 = vpop.f32.mrb[4].mxu1 }
 0x212   :  { %v3034_v19 = vadd.f32 %v1210_v17, %v478_v12  ;;  %v3036_v21 = vadd.f32 %v1292_v18, %v486_v13  ;;  %v1212_v23 = vpop.f32.mrb[5].mxu0  ;;  %v1294_v24 = vpop.f32.mrb[5].mxu1  ;;  %v3437_v12 = vld [vmem:[%s4618_s5 + $0x2e0] ss:$16 sps:$4 sm:$0xff]   ;;  %v3440_v13 = vld [vmem:[%s4618_s5 + $0x2e8] ss:$16 sps:$4 sm:$0xff]  }
 0x213   :  { %v3035_v25 = vadd.f32 %v1212_v23, %v482_v15  ;;  %v3037_v27 = vadd.f32 %v1294_v24, %v490_v16  ;;  %v1214_v28 = vpop.f32.mrb[6].mxu0  ;;  %v1296_v29 = vpop.f32.mrb[6].mxu1  ;;  %v3448_v15 = vld [vmem:[%s4618_s5 + $0x30c] ss:$16 sps:$4 sm:$0xff]   ;;  %v3443_v16 = vld [vmem:[%s4618_s5 + $0x300] ss:$16 sps:$4 sm:$0xff]  }
 0x214   :  { %v1299_v30 = vmax.f32 %v3034_v19, 0.0  ;;  %v1301_v31 = vmax.f32 %v3036_v21, 0.0  ;;  %v1215_v33 = vpop.f32.mrb[7].mxu0  ;;  %v1297_v34 = vpop.f32.mrb[7].mxu1  ;;  %v3446_v17 = vld [vmem:[%s4618_s5 + $0x308] ss:$16 sps:$4 sm:$0xff]  }
 0x215   :  { %v1300_v35 = vmax.f32 %v3035_v25, 0.0  ;;  %v1302_v36 = vmax.f32 %v3037_v27, 0.0  ;;  %v3451_v18 = vld [vmem:[%s4618_s5 + $0x324] ss:$16 sps:$4 sm:$0xff]   ;;  %v3454_v19 = vld [vmem:[%s4618_s5 + $0x32c] ss:$16 sps:$4 sm:$0xff]  }
 0x216   :  { %v1325_v37 = vmul.f32 %v1308_v20, %v1299_v30  ;;  %v4309_v42 = vmul.f32 %v1316_v22, %v1301_v31  ;;  %v3449_v20 = vld [vmem:[%s4618_s5 + $0x320] ss:$16 sps:$4 sm:$0xff]   ;;  %v3452_v21 = vld [vmem:[%s4618_s5 + $0x328] ss:$16 sps:$4 sm:$0xff]   ;;  %v3457_v22 = vld [vmem:[%s4618_s5 + $0x344] ss:$16 sps:$4 sm:$0xff]  }
 0x217   :  { %v1326_v43 = vmul.f32 %v1312_v26, %v1300_v35  ;;  %v1328_v44 = vmul.f32 %v1320_v32, %v1302_v36  ;;  %v3460_v23 = vld [vmem:[%s4618_s5 + $0x34c] ss:$16 sps:$4 sm:$0xff]   ;;  %v3455_v24 = vld [vmem:[%s4618_s5 + $0x340] ss:$16 sps:$4 sm:$0xff]   ;;  %v3458_v25 = vld [vmem:[%s4618_s5 + $0x348] ss:$16 sps:$4 sm:$0xff]  }
 0x218   :  { %v1329_v48 = vpack.c.bf16 %v1325_v37, %v1325_v37  ;;  %v3463_v26 = vld [vmem:[%s4618_s5 + $0x364] ss:$16 sps:$4 sm:$0xff]   ;;  %v3466_v27 = vld [vmem:[%s4618_s5 + $0x36c] ss:$16 sps:$4 sm:$0xff]   ;;  %v3461_v28 = vld [vmem:[%s4618_s5 + $0x360] ss:$16 sps:$4 sm:$0xff]  }
 0x219   :  { %v1330_v45 = vpack.c.bf16 %v1326_v43, %v1326_v43  ;;  %v1332_v51 = vpack.c.bf16 %v1328_v44, %v1328_v44  ;;  %v3464_v29 = vld [vmem:[%s4618_s5 + $0x368] ss:$16 sps:$4 sm:$0xff]   ;;  %v3469_v30 = vld [vmem:[%s4618_s5 + $0x384] ss:$16 sps:$4 sm:$0xff]   ;;  %v3472_v31 = vld [vmem:[%s4618_s5 + $0x38c] ss:$16 sps:$4 sm:$0xff]  }
 0x21a   :  { %v3467_v32 = vld [vmem:[%s4618_s5 + $0x380] ss:$16 sps:$4 sm:$0xff]   ;;  %v3470_v33 = vld [vmem:[%s4618_s5 + $0x388] ss:$16 sps:$4 sm:$0xff]   ;;  %v3475_v34 = vld [vmem:[%s4618_s5 + $0x3a4] ss:$16 sps:$4 sm:$0xff]  }
 0x21b   :  { %2155 = vmatprep.mubr.bf16.mxu0 %v1330_v45  ;;  %2237 = vmatprep.mubr.bf16.mxu1 %v1330_v45  ;;  %v3478_v35 = vld [vmem:[%s4618_s5 + $0x3ac] ss:$16 sps:$4 sm:$0xff]   ;;  %v3473_v36 = vld [vmem:[%s4618_s5 + $0x3a0] ss:$16 sps:$4 sm:$0xff]   ;;  %v3476_v37 = vld [vmem:[%s4618_s5 + $0x3a8] ss:$16 sps:$4 sm:$0xff]  }
 0x21c   :  { %2156 = vmatmul.mubr.bf16.vlgmr.msra.gmra.mrb[8].mxu0 %v1329_v48  ;;  %2238 = vmatmul.mubr.bf16.vlgmr.msra.gmra.mrb[8].mxu1 %v1329_v48  ;;  %v3481_v43 = vld [vmem:[%s4618_s5 + $0x3c4] ss:$16 sps:$4 sm:$0xff]   ;;  %v3484_v44 = vld [vmem:[%s4618_s5 + $0x3cc] ss:$16 sps:$4 sm:$0xff]   ;;  %v3479_v45 = vld [vmem:[%s4618_s5 + $0x3c0] ss:$16 sps:$4 sm:$0xff]  }
 0x21d   :  { %2165 = vmatpush1.bf16.msra.mxu0 %v3395_v46  ;;  %2247 = vmatpush1.bf16.msra.mxu1 %v3398_v47  ;;  %v3482_v46 = vld [vmem:[%s4618_s5 + $0x3c8] ss:$16 sps:$4 sm:$0xff]   ;;  %v3487_v47 = vld [vmem:[%s4618_s5 + $0x3e4] ss:$16 sps:$4 sm:$0xff]   ;;  %v3490_v48 = vld [vmem:[%s4618_s5 + $0x3ec] ss:$16 sps:$4 sm:$0xff]  }
 0x21e   :  { %2196 = vmatprep.mubr.bf16.mxu0 %v1332_v51  ;;  %2278 = vmatprep.mubr.bf16.mxu1 %v1332_v51  ;;  %v3491_v51 = vld [vmem:[%s4620_s7 + $0x40] sm:$0xff]  }
 0x21f   :  { %2166 = vmatprep.subr.bf16.mxu0 %v3403_v49  ;;  %2248 = vmatprep.subr.bf16.mxu1 %v3406_v50  ;;  %v3485_v49 = vld [vmem:[%s4618_s5 + $0x3e0] ss:$16 sps:$4 sm:$0xff]   ;;  %v3488_v50 = vld [vmem:[%s4618_s5 + $0x3e8] ss:$16 sps:$4 sm:$0xff]  }
 0x221   :  { %2167 = vmatpush1.bf16.msra.mxu0 %v3401_v52  ;;  %2249 = vmatpush1.bf16.msra.mxu1 %v3404_v54  ;;  %v3492_v52 = vld [vmem:[%s4620_s7 + $0xc0] sm:$0xff]  }
 0x222   :  { %2168 = vmatprep.subr.bf16.mxu0 %v3409_v56  ;;  %2250 = vmatprep.subr.bf16.mxu1 %v3412_v57  ;;  %v3493_v54 = vld [vmem:[%s4620_s7] sm:$0xff]   ;;  %v1331_v57 = vpack.c.bf16 %v4309_v42, %v4309_v42  ;;  %v3498_v42 = vld [vmem:[%s4620_s7 + $0x88] sm:$0xff]  }
 0x223   :  { %v3494_v56 = vld [vmem:[%s4620_s7 + $0x80] sm:$0xff]  }
 0x225   :  { %2169 = vmatpush1.bf16.msra.mxu0 %v3407_v58  ;;  %2251 = vmatpush1.bf16.msra.mxu1 %v3410_v38  ;;  %v3495_v58 = vld [vmem:[%s4620_s7 + $0x48] sm:$0xff]  }
 0x226   :  { %2170 = vmatprep.subr.bf16.mxu0 %v3415_v59  ;;  %2252 = vmatprep.subr.bf16.mxu1 %v3418_v60  ;;  %v3496_v38 = vld [vmem:[%s4620_s7 + $0xc8] sm:$0xff]   ;;  %v3499_v60 = vld [vmem:[%s4620_s7 + $0x50] sm:$0xff]  }
 0x227   :  { %v3497_v59 = vld [vmem:[%s4620_s7 + $0x8] sm:$0xff]  }
 0x229   :  { %2171 = vmatpush1.bf16.msra.mxu0 %v3413_v61  ;;  %2253 = vmatpush1.bf16.msra.mxu1 %v3416_v40  ;;  %v3500_v61 = vld [vmem:[%s4620_s7 + $0xd0] sm:$0xff]  }
 0x22a   :  { %2172 = vmatprep.subr.bf16.mxu0 %v3421_v62  ;;  %2254 = vmatprep.subr.bf16.mxu1 %v3424_v63  ;;  %v3501_v40 = vld [vmem:[%s4620_s7 + $0x10] sm:$0xff]   ;;  %v3503_v63 = vld [vmem:[%s4620_s7 + $0x58] sm:$0xff]  }
 0x22b   :  { %v3502_v62 = vld [vmem:[%s4620_s7 + $0x90] sm:$0xff]  }
 0x22d   :  { %2173 = vmatpush1.bf16.msra.mxu0 %v3419_v1  ;;  %2255 = vmatpush1.bf16.msra.mxu1 %v3422_v2  ;;  %v3504_v1 = vld [vmem:[%s4620_s7 + $0xd8] sm:$0xff]  }
 0x22e   :  { %2174 = vmatprep.subr.bf16.mxu0 %v3427_v0  ;;  %2256 = vmatprep.subr.bf16.mxu1 %v3430_v3  ;;  %v3505_v2 = vld [vmem:[%s4620_s7 + $0x18] sm:$0xff]   ;;  %v3507_v3 = vld [vmem:[%s4620_s7 + $0x60] sm:$0xff]  }
 0x22f   :  { %v3506_v0 = vld [vmem:[%s4620_s7 + $0x98] sm:$0xff]  }
 0x231   :  { %2175 = vmatpush1.bf16.msra.mxu0 %v3425_v4  ;;  %2257 = vmatpush1.bf16.msra.mxu1 %v3428_v5  ;;  %v3508_v4 = vld [vmem:[%s4620_s7 + $0xe0] sm:$0xff]  }
 0x232   :  { %2176 = vmatprep.subr.bf16.mxu0 %v3433_v6  ;;  %2258 = vmatprep.subr.bf16.mxu1 %v3436_v7  ;;  %v3509_v5 = vld [vmem:[%s4620_s7 + $0x20] sm:$0xff]   ;;  %v3511_v7 = vld [vmem:[%s4620_s7 + $0x68] sm:$0xff]  }
 0x233   :  { %v3510_v6 = vld [vmem:[%s4620_s7 + $0xa0] sm:$0xff]  }
 0x235   :  { %2177 = vmatpush1.bf16.msra.mxu0 %v3431_v8  ;;  %2259 = vmatpush1.bf16.msra.mxu1 %v3434_v9  ;;  %v3512_v8 = vld [vmem:[%s4620_s7 + $0xe8] sm:$0xff]  }
 0x236   :  { %2178 = vmatprep.subr.bf16.mxu0 %v3439_v10  ;;  %2260 = vmatprep.subr.bf16.mxu1 %v3442_v11  ;;  %v3513_v9 = vld [vmem:[%s4620_s7 + $0x28] sm:$0xff]   ;;  %v3515_v11 = vld [vmem:[%s4620_s7 + $0x70] sm:$0xff]  }
 0x237   :  { %v3514_v10 = vld [vmem:[%s4620_s7 + $0xa8] sm:$0xff]  }
 0x239   :  { %2179 = vmatpush1.bf16.msra.mxu0 %v3437_v12  ;;  %2261 = vmatpush1.bf16.msra.mxu1 %v3440_v13  ;;  %v3516_v12 = vld [vmem:[%s4620_s7 + $0xf0] sm:$0xff]  }
 0x23a   :  { %2180 = vmatprep.subr.bf16.mxu0 %v3445_v14  ;;  %2262 = vmatprep.subr.bf16.mxu1 %v3448_v15  ;;  %v3517_v13 = vld [vmem:[%s4620_s7 + $0x30] sm:$0xff]   ;;  %v3519_v15 = vld [vmem:[%s4620_s7 + $0x78] sm:$0xff]  }
 0x23b   :  { %v3518_v14 = vld [vmem:[%s4620_s7 + $0xb0] sm:$0xff]  }
 0x23d   :  { %2181 = vmatpush1.bf16.msra.mxu0 %v3443_v16  ;;  %2263 = vmatpush1.bf16.msra.mxu1 %v3446_v17  ;;  %v3520_v16 = vld [vmem:[%s4620_s7 + $0xf8] sm:$0xff]  }
 0x23e   :  { %2182 = vmatprep.subr.bf16.mxu0 %v3451_v18  ;;  %2264 = vmatprep.subr.bf16.mxu1 %v3454_v19  ;;  %v3521_v17 = vld [vmem:[%s4620_s7 + $0x38] sm:$0xff]   ;;  %v1461_v19 = vld [vmem:[%s4623_s6] sm:$0xf] }
 0x23f   :  { %v3522_v18 = vld [vmem:[%s4620_s7 + $0xb8] sm:$0xff]  }
 0x241   :  { %2183 = vmatpush1.bf16.msra.mxu0 %v3449_v20  ;;  %2265 = vmatpush1.bf16.msra.mxu1 %v3452_v21  ;;  %v1466_v20 = vrot.slane %v1461_v19, %v3884_v39  ;;  %v1474_v21 = vrot.slane %v1461_v19, %v4056_v53 }
 0x242   :  { %2184 = vmatprep.subr.bf16.mxu0 %v3457_v22  ;;  %2266 = vmatprep.subr.bf16.mxu1 %v3460_v23  ;;  %v2291_v22 = vld [vmem:[%s4624_s10] sm:$0xf]  ;;  %v1470_v23 = vrot.slane %v1461_v19, %v3892_v41 }
 0x245   :  { %2185 = vmatpush1.bf16.msra.mxu0 %v3455_v24  ;;  %2267 = vmatpush1.bf16.msra.mxu1 %v3458_v25  ;;  %v1478_v24 = vrot.slane %v1461_v19, %v3908_v55 }
 0x246   :  { %2186 = vmatprep.subr.bf16.mxu0 %v3463_v26  ;;  %2268 = vmatprep.subr.bf16.mxu1 %v3466_v27 }
 0x249   :  { %2187 = vmatpush1.bf16.msra.mxu0 %v3461_v28  ;;  %2269 = vmatpush1.bf16.msra.mxu1 %v3464_v29  ;;  %v2296_v28 = vrot.slane %v2291_v22, %v3884_v39 }
 0x24a   :  { %2188 = vmatprep.subr.bf16.mxu0 %v3469_v30  ;;  %2270 = vmatprep.subr.bf16.mxu1 %v3472_v31  ;;  %v2304_v30 = vrot.slane %v2291_v22, %v4056_v53 }
 0x24d   :  { %2189 = vmatpush1.bf16.msra.mxu0 %v3467_v32  ;;  %2271 = vmatpush1.bf16.msra.mxu1 %v3470_v33 }
 0x24e   :  { %2190 = vmatprep.subr.bf16.mxu0 %v3475_v34  ;;  %2272 = vmatprep.subr.bf16.mxu1 %v3478_v35  ;;  %v2300_v34 = vrot.slane %v2291_v22, %v3892_v41 }
 0x251   :  { %2191 = vmatpush1.bf16.msra.mxu0 %v3473_v36  ;;  %2273 = vmatpush1.bf16.msra.mxu1 %v3476_v37  ;;  %v2308_v36 = vrot.slane %v2291_v22, %v3908_v55 }
 0x252   :  { %2192 = vmatprep.subr.bf16.mxu0 %v3481_v43  ;;  %2274 = vmatprep.subr.bf16.mxu1 %v3484_v44 }
 0x255   :  { %2193 = vmatpush1.bf16.msra.mxu0 %v3479_v45  ;;  %2275 = vmatpush1.bf16.msra.mxu1 %v3482_v46 }
 0x256   :  { %2194 = vmatprep.subr.bf16.mxu0 %v3487_v47  ;;  %2276 = vmatprep.subr.bf16.mxu1 %v3490_v48 }
 0x259   :  { %2195 = vmatpush1.bf16.msra.mxu0 %v3485_v49  ;;  %2277 = vmatpush1.bf16.msra.mxu1 %v3488_v50 }
 0x25a   :  { %2990 = vmatprep.subr.bf16.mxu0 %v3491_v51  ;;  %3012 = vmatprep.subr.bf16.mxu1 %v3492_v52 }
 0x25c   :  { %2197 = vmatmul.mubr.bf16.vlgmr.msra.gmra.mrb[8].mxu0 %v1331_v57  ;;  %2279 = vmatmul.mubr.bf16.vlgmr.msra.gmra.mrb[8].mxu1 %v1331_v57 }
 0x25d   :  { %2991 = vmatpush3.bf16.msra.mxu0 %v3493_v54  ;;  %3013 = vmatpush3.bf16.msra.mxu1 %v3494_v56 }
 0x25e   :  { %2992 = vmatprep.subr.bf16.mxu0 %v3495_v58  ;;  %3014 = vmatprep.subr.bf16.mxu1 %v3496_v38  ;;  %v2957_v58 = vld [vmem:[%s4625_s8] ss:$0 sm:$0xff] }
 0x261   :  { %2993 = vmatpush3.bf16.msra.mxu0 %v3497_v59  ;;  %3015 = vmatpush3.bf16.msra.mxu1 %v3498_v42 }
 0x262   :  { %2994 = vmatprep.subr.bf16.mxu0 %v3499_v60  ;;  %3016 = vmatprep.subr.bf16.mxu1 %v3500_v61 }
 0x265   :  { %2995 = vmatpush3.bf16.msra.mxu0 %v3501_v40  ;;  %3017 = vmatpush3.bf16.msra.mxu1 %v3502_v62 }
 0x266   :  { %2996 = vmatprep.subr.bf16.mxu0 %v3503_v63  ;;  %3018 = vmatprep.subr.bf16.mxu1 %v3504_v1 }
 0x269   :  { %2997 = vmatpush3.bf16.msra.mxu0 %v3505_v2  ;;  %3019 = vmatpush3.bf16.msra.mxu1 %v3506_v0 }
 0x26a   :  { %2998 = vmatprep.subr.bf16.mxu0 %v3507_v3  ;;  %3020 = vmatprep.subr.bf16.mxu1 %v3508_v4 }
 0x26d   :  { %2999 = vmatpush3.bf16.msra.mxu0 %v3509_v5  ;;  %3021 = vmatpush3.bf16.msra.mxu1 %v3510_v6 }
 0x26e   :  { %3000 = vmatprep.subr.bf16.mxu0 %v3511_v7  ;;  %3022 = vmatprep.subr.bf16.mxu1 %v3512_v8 }
 0x271   :  { %3001 = vmatpush3.bf16.msra.mxu0 %v3513_v9  ;;  %3023 = vmatpush3.bf16.msra.mxu1 %v3514_v10 }
 0x272   :  { %3002 = vmatprep.subr.bf16.mxu0 %v3515_v11  ;;  %3024 = vmatprep.subr.bf16.mxu1 %v3516_v12 }
 0x275   :  { %3003 = vmatpush3.bf16.msra.mxu0 %v3517_v13  ;;  %3025 = vmatpush3.bf16.msra.mxu1 %v3518_v14 }
 0x276   :  { %3004 = vmatprep.subr.bf16.mxu0 %v3519_v15  ;;  %3026 = vmatprep.subr.bf16.mxu1 %v3520_v16 }
 0x279   :  { %3005 = vmatpush3.bf16.msra.mxu0 %v3521_v17  ;;  %3027 = vmatpush3.bf16.msra.mxu1 %v3522_v18 }
 0x32f   :  { %v2198_v25 = vpop.f32.mrb[8].mxu0  ;;  %v2280_v26 = vpop.f32.mrb[8].mxu1 }
 0x330   :  { %v3038_v27 = vadd.f32 %v2198_v25, %v1466_v20  ;;  %v3040_v29 = vadd.f32 %v2280_v26, %v1474_v21  ;;  %v2200_v31 = vpop.f32.mrb[9].mxu0  ;;  %v2282_v32 = vpop.f32.mrb[9].mxu1 }
 0x331   :  { %v3039_v33 = vadd.f32 %v2200_v31, %v1470_v23  ;;  %v3041_v35 = vadd.f32 %v2282_v32, %v1478_v24  ;;  %v2202_v37 = vpop.f32.mrb[10].mxu0  ;;  %v2284_v43 = vpop.f32.mrb[10].mxu1 }
 0x332   :  { %v2287_v44 = vmax.f32 %v3038_v27, 0.0  ;;  %v2289_v45 = vmax.f32 %v3040_v29, 0.0  ;;  %v2203_v46 = vpop.f32.mrb[11].mxu0  ;;  %v2285_v47 = vpop.f32.mrb[11].mxu1 }
 0x333   :  { %v2288_v48 = vmax.f32 %v3039_v33, 0.0  ;;  %v2290_v49 = vmax.f32 %v3041_v35, 0.0 }
 0x334   :  { %v2313_v39 = vmul.f32 %v2296_v28, %v2287_v44  ;;  %v2315_v50 = vmul.f32 %v2304_v30, %v2289_v45 }
 0x335   :  { %v2314_v51 = vmul.f32 %v2300_v34, %v2288_v48  ;;  %v2316_v53 = vmul.f32 %v2308_v36, %v2290_v49 }
 0x336   :  { %v2317_v56 = vpack.c.bf16 %v2313_v39, %v2313_v39  ;;  %v2319_v57 = vpack.c.bf16 %v2315_v50, %v2315_v50 }
 0x337   :  { %v2318_v52 = vpack.c.bf16 %v2314_v51, %v2314_v51  ;;  %v2320_v54 = vpack.c.bf16 %v2316_v53, %v2316_v53 }
 0x339   :  { %2616 = vmatprep.mubr.bf16.mxu0 %v2318_v52  ;;  %2656 = vmatprep.mubr.bf16.mxu1 %v2320_v54 }
 0x33a   :  { %2617 = vmatmul.mubr.bf16.vlgmr.msra.gmra.mrb[12].mxu0 %v2317_v56  ;;  %2657 = vmatmul.mubr.bf16.vlgmr.msra.gmra.mrb[12].mxu1 %v2319_v57 }
 0x40d   :  { %v3006_v41 = vpop.f32.mrb[12].mxu0  ;;  %v3028_v55 = vpop.f32.mrb[12].mxu1 }
 0x40e   :  { %v3007_v38 = vpop.f32.mrb[13].mxu0  ;;  %v3029_v59 = vpop.f32.mrb[13].mxu1 }
 0x40f   :  { %v3008_v42 = vadd.f32 %v3007_v38, %v3006_v41  ;;  %v3030_v60 = vadd.f32 %v3029_v59, %v3028_v55  ;;  %v3009_v61 = vpop.f32.mrb[14].mxu0  ;;  %v3031_v40 = vpop.f32.mrb[14].mxu1 }
 0x410   :  { %v3010_v62 = vpop.f32.mrb[15].mxu0  ;;  %v3032_v63 = vpop.f32.mrb[15].mxu1 }
 0x411   :  { %v2619_v1 = vadd.f32 %v3008_v42, %v2957_v58 }
 0x413   :  { %v2659_v2 = vadd.f32 %v3030_v60, %v2619_v1 }
 0x415   :  { %2664 = vst [vmem:[%s4626_s11] sm:$0xff] %v2659_v2 }

</bundles_post_ra>
